<compile_context>
chip_gen: v5e
topology: v5e:2x2
jax: 0.10.0
libtpu: 0.0.40
codegen_flags: <defaults>
</compile_context>

<pallas_src>
import jax
import jax.numpy as jnp
from jax.experimental import pallas as pl
from jax.experimental.pallas import tpu as pltpu

# ----- model hyper-parameters (tiny, BERT-shaped) -----
VOCAB = 64
HIDDEN = 128
N_HEADS = 4
HEAD_DIM = HIDDEN // N_HEADS
FFN = 256
N_LAYERS = 2
MAX_POS = 32
CLASS_NUM = 8
CLASS_PAD = 128            # lane-dense classifier width; real classes live in [:CLASS_NUM]
BATCH = 2
SEQ = 16
LN_EPS = 1e-12
NEG_INF = -1e9


# ----------------- in-kernel helpers -----------------
def _layernorm(x, gamma, beta, eps=LN_EPS):
    mean = jnp.mean(x, axis=-1, keepdims=True)
    var = jnp.mean((x - mean) ** 2, axis=-1, keepdims=True)
    return (x - mean) * jax.lax.rsqrt(var + eps) * gamma + beta


def _encoder_step(emb_ref, emb_g_ref, emb_b_ref,
                  wqkv_ref, bqkv_ref, wo_ref, bo_ref,
                  ln1_g_ref, ln1_b_ref, w1_ref, b1_ref, w2_ref, b2_ref,
                  ln2_g_ref, ln2_b_ref, hid_ref):
    """One encoder layer (layer index = grid axis 1) for this grid step's example."""
    l = pl.program_id(1)

    # embedding LayerNorm prologue, only before the first layer
    @pl.when(l == 0)
    def _():
        hid_ref[...] = _layernorm(emb_ref[...], emb_g_ref[...], emb_b_ref[...])

    hidden = hid_ref[...]                                      # (S, H) f32
    xb = hidden.astype(jnp.bfloat16)

    # fused QKV: single wide matmul + single fused bias; heads contiguous inside each third
    qkv = jnp.dot(xb, wqkv_ref[0], preferred_element_type=jnp.float32) + bqkv_ref[0]
    q = qkv[:, :HIDDEN]                    # 128-lane boundary splits (free)
    k = qkv[:, HIDDEN:2 * HIDDEN]
    v = qkv[:, 2 * HIDDEN:]

    attn = None
    for h in range(N_HEADS):
        sl = slice(h * HEAD_DIM, (h + 1) * HEAD_DIM)
        qh = q[:, sl].astype(jnp.bfloat16)          # softmax scale already folded into W_q
        kh = k[:, sl].astype(jnp.bfloat16)
        vh = v[:, sl].astype(jnp.bfloat16)
        s = jnp.einsum('qd,kd->qk', qh, kh, preferred_element_type=jnp.float32)
        s = s - jnp.max(s, axis=-1, keepdims=True)
        p = jnp.exp(s)
        p = p * pl.reciprocal(jnp.sum(p, axis=-1, keepdims=True), approx=True)
        ctx_h = jnp.dot(p.astype(jnp.bfloat16), vh, preferred_element_type=jnp.float32)
        # per-head output-projection accumulation (no lane concat on the critical path)
        part = jnp.dot(ctx_h.astype(jnp.bfloat16), wo_ref[0, h],
                       preferred_element_type=jnp.float32)
        attn = part if attn is None else attn + part
    attn = attn + bo_ref[0]

    h1 = _layernorm(hidden + attn, ln1_g_ref[0], ln1_b_ref[0])

    ff = jnp.dot(h1.astype(jnp.bfloat16), w1_ref[0],
                 preferred_element_type=jnp.float32) + b1_ref[0]
    # TODO(synk): HF BERT uses exact erf GELU; tanh approximation used here.
    ff = jax.nn.gelu(ff, approximate=True)
    ff = jnp.dot(ff.astype(jnp.bfloat16), w2_ref[0],
                 preferred_element_type=jnp.float32) + b2_ref[0]

    hid_ref[...] = _layernorm(h1 + ff, ln2_g_ref[0], ln2_b_ref[0])


# ----------------- predict kernel (no cross-entropy work) -----------------
def predict_kernel(emb_ref, emb_g_ref, emb_b_ref,
                   wqkv_ref, bqkv_ref, wo_ref, bo_ref,
                   ln1_g_ref, ln1_b_ref, w1_ref, b1_ref, w2_ref, b2_ref,
                   ln2_g_ref, ln2_b_ref, clsw_ref, clsb_ref,
                   logits_ref, hid_ref):
    _encoder_step(emb_ref, emb_g_ref, emb_b_ref, wqkv_ref, bqkv_ref, wo_ref, bo_ref,
                  ln1_g_ref, ln1_b_ref, w1_ref, b1_ref, w2_ref, b2_ref,
                  ln2_g_ref, ln2_b_ref, hid_ref)

    @pl.when(pl.program_id(1) == N_LAYERS - 1)
    def _():
        logits_ref[...] = (jnp.dot(hid_ref[...].astype(jnp.bfloat16), clsw_ref[...],
                                   preferred_element_type=jnp.float32) + clsb_ref[...])


# ----------------- loss kernel (no padded-logit store; per-example partials) -----------------
def loss_kernel(emb_ref, tgt_ref, emb_g_ref, emb_b_ref,
                wqkv_ref, bqkv_ref, wo_ref, bo_ref,
                ln1_g_ref, ln1_b_ref, w1_ref, b1_ref, w2_ref, b2_ref,
                ln2_g_ref, ln2_b_ref, clsw_ref, clsb_ref,
                parts_ref, hid_ref):
    _encoder_step(emb_ref, emb_g_ref, emb_b_ref, wqkv_ref, bqkv_ref, wo_ref, bo_ref,
                  ln1_g_ref, ln1_b_ref, w1_ref, b1_ref, w2_ref, b2_ref,
                  ln2_g_ref, ln2_b_ref, hid_ref)

    @pl.when(pl.program_id(1) == N_LAYERS - 1)
    def _():
        logits = (jnp.dot(hid_ref[...].astype(jnp.bfloat16), clsw_ref[...],
                          preferred_element_type=jnp.float32) + clsb_ref[...])   # (S, C_PAD)
        tgt = tgt_ref[...]                                                       # (S, 1) i32
        m = jnp.max(logits, axis=-1, keepdims=True)
        lse = jnp.log(jnp.sum(jnp.exp(logits - m), axis=-1, keepdims=True)) + m
        cls_ids = jax.lax.broadcasted_iota(jnp.int32, logits.shape, 1)
        onehot = (cls_ids == tgt).astype(jnp.float32)
        picked = jnp.sum(logits * onehot, axis=-1, keepdims=True)
        valid = (tgt != -1).astype(jnp.float32)
        num = jnp.sum((lse - picked) * valid, keepdims=True)                     # (1, 1)
        den = jnp.sum(valid, keepdims=True)                                      # (1, 1)
        lane = jax.lax.broadcasted_iota(jnp.int32, (1, CLASS_PAD), 1)
        # lane 0 = CE numerator, lane 1 = valid-token count, rest zero (lane-dense store)
        parts_ref[0] = jnp.where(lane == 0, num, jnp.where(lane == 1, den, 0.0))


# ----------------- BlockSpecs -----------------
_LM2 = lambda b, l: (0, 0)            # layer-independent 2D (emb LN, classifier)
_LM3 = lambda b, l: (l, 0, 0)         # layer-indexed 3D weights/biases
_LM4 = lambda b, l: (l, 0, 0, 0)      # layer-indexed 4D (per-head Wo)
_BM2 = lambda b, l: (b, 0)            # example-indexed 2D activations / targets / logits


def _common_weight_specs():
    return [
        pl.BlockSpec((1, HIDDEN), _LM2),                       # emb_ln_g
        pl.BlockSpec((1, HIDDEN), _LM2),                       # emb_ln_b
        pl.BlockSpec((1, HIDDEN, 3 * HIDDEN), _LM3),           # wqkv
        pl.BlockSpec((1, 1, 3 * HIDDEN), _LM3),                # bqkv
        pl.BlockSpec((1, N_HEADS, HEAD_DIM, HIDDEN), _LM4),    # wo
        pl.BlockSpec((1, 1, HIDDEN), _LM3),                    # bo
        pl.BlockSpec((1, 1, HIDDEN), _LM3),                    # ln1_g
        pl.BlockSpec((1, 1, HIDDEN), _LM3),                    # ln1_b
        pl.BlockSpec((1, HIDDEN, FFN), _LM3),                  # w1
        pl.BlockSpec((1, 1, FFN), _LM3),                       # b1
        pl.BlockSpec((1, FFN, HIDDEN), _LM3),                  # w2
        pl.BlockSpec((1, 1, HIDDEN), _LM3),                    # b2
        pl.BlockSpec((1, 1, HIDDEN), _LM3),                    # ln2_g
        pl.BlockSpec((1, 1, HIDDEN), _LM3),                    # ln2_b
        pl.BlockSpec((HIDDEN, CLASS_PAD), _LM2),               # cls_w
        pl.BlockSpec((1, CLASS_PAD), _LM2),                    # cls_b
    ]


def _weight_args(params):
    return (params['emb_ln_g'], params['emb_ln_b'],
            params['wqkv'], params['bqkv'], params['wo'], params['bo'],
            params['ln1_g'], params['ln1_b'],
            params['w1'], params['b1'], params['w2'], params['b2'],
            params['ln2_g'], params['ln2_b'],
            params['cls_w'], params['cls_b'])


def _embed(params, x):
    B, S = x.shape
    emb = (params['word_emb'][x]
           + params['pos_emb'][None, :S, :]
           + params['type_emb'][0][None, None, :])
    return emb.reshape(B * S, HIDDEN).astype(jnp.float32)


# ----------------- wrappers (two static variants, as suggested) -----------------
@jax.jit
def _predict_impl(params, x):
    B, S = x.shape
    emb2d = _embed(params, x)
    logits_pad = pl.pallas_call(
        predict_kernel,
        out_shape=jax.ShapeDtypeStruct((B * S, CLASS_PAD), jnp.float32),
        grid_spec=pltpu.PrefetchScalarGridSpec(
            num_scalar_prefetch=0,
            grid=(B, N_LAYERS),
            in_specs=[pl.BlockSpec((S, HIDDEN), _BM2)] + _common_weight_specs(),
            out_specs=pl.BlockSpec((S, CLASS_PAD), _BM2),
            scratch_shapes=[pltpu.VMEM((S, HIDDEN), jnp.float32)]),
        compiler_params=pltpu.CompilerParams(
            dimension_semantics=("parallel", "arbitrary")),
    )(emb2d, *_weight_args(params))
    return logits_pad[:, :CLASS_NUM].reshape(B, S, CLASS_NUM)


@jax.jit
def _loss_impl(params, x, tgt2d):
    B, S = x.shape
    emb2d = _embed(params, x)
    parts = pl.pallas_call(
        loss_kernel,
        out_shape=jax.ShapeDtypeStruct((B, 1, CLASS_PAD), jnp.float32),
        grid_spec=pltpu.PrefetchScalarGridSpec(
            num_scalar_prefetch=0,
            grid=(B, N_LAYERS),
            in_specs=[pl.BlockSpec((S, HIDDEN), _BM2),
                      pl.BlockSpec((S, 1), _BM2)] + _common_weight_specs(),
            out_specs=pl.BlockSpec((1, 1, CLASS_PAD), lambda b, l: (b, 0, 0)),
            scratch_shapes=[pltpu.VMEM((S, HIDDEN), jnp.float32)]),
        compiler_params=pltpu.CompilerParams(
            dimension_semantics=("parallel", "arbitrary")),
    )(emb2d, tgt2d, *_weight_args(params))
    # masked mean CE; when every target is -1 this is 0/0 -> NaN, matching torch.
    return jnp.sum(parts[:, 0, 0]) / jnp.sum(parts[:, 0, 1])


def torch_model_forward(params, x, target=None):
    """Mirrors TorchModel.forward: returns loss if target is given, else (B,S,C) logits."""
    # TODO(synk): self.use_crf branch is False in the reference module; CRF not implemented.
    if target is None:
        return _predict_impl(params, x)
    B, S = x.shape
    tgt2d = target.reshape(B * S, 1).astype(jnp.int32)
    return _loss_impl(params, x, tgt2d)


# ----------------- parameter init (deterministic, synthetic) -----------------
def init_params(key):
    keys = iter(jax.random.split(key, 16))

    def nrm(shape, scale=0.02):
        return (scale * jax.random.normal(next(keys), shape)).astype(jnp.float32)

    ones = lambda s: jnp.ones(s, jnp.float32)
    zeros = lambda s: jnp.zeros(s, jnp.float32)

    wq = nrm((N_LAYERS, HIDDEN, HIDDEN))
    wk = nrm((N_LAYERS, HIDDEN, HIDDEN))
    wv = nrm((N_LAYERS, HIDDEN, HIDDEN))
    bq = zeros((N_LAYERS, 1, HIDDEN))
    bk = zeros((N_LAYERS, 1, HIDDEN))
    bv = zeros((N_LAYERS, 1, HIDDEN))
    wo = nrm((N_LAYERS, HIDDEN, HIDDEN))
    cls_w = nrm((HIDDEN, CLASS_NUM))

    # fold the 1/sqrt(head_dim) softmax scale into the Q projection (weights + bias)
    scale = 1.0 / (HEAD_DIM ** 0.5)
    wqkv = jnp.concatenate([wq * scale, wk, wv], axis=-1)      # (L, H, 3H), heads contiguous per third
    bqkv = jnp.concatenate([bq * scale, bk, bv], axis=-1)      # (L, 1, 3H)

    params = {
        'word_emb': nrm((VOCAB, HIDDEN)),
        'pos_emb': nrm((MAX_POS, HIDDEN)),
        'type_emb': nrm((2, HIDDEN)),
        'emb_ln_g': ones((1, HIDDEN)),
        'emb_ln_b': zeros((1, HIDDEN)),
        # attention (bf16 matmul operands, f32 biases / LN params)
        'wqkv': wqkv.astype(jnp.bfloat16),
        'bqkv': bqkv,
        'wo': wo.reshape(N_LAYERS, N_HEADS, HEAD_DIM, HIDDEN).astype(jnp.bfloat16),
        'bo': zeros((N_LAYERS, 1, HIDDEN)),
        'ln1_g': ones((N_LAYERS, 1, HIDDEN)),
        'ln1_b': zeros((N_LAYERS, 1, HIDDEN)),
        # FFN
        'w1': nrm((N_LAYERS, HIDDEN, FFN)).astype(jnp.bfloat16),
        'b1': zeros((N_LAYERS, 1, FFN)),
        'w2': nrm((N_LAYERS, FFN, HIDDEN)).astype(jnp.bfloat16),
        'b2': zeros((N_LAYERS, 1, HIDDEN)),
        'ln2_g': ones((N_LAYERS, 1, HIDDEN)),
        'ln2_b': zeros((N_LAYERS, 1, HIDDEN)),
        # lane-dense classifier: zero-pad weights, -1e9-pad bias so padded classes vanish from softmax
        'cls_w': jnp.zeros((HIDDEN, CLASS_PAD), jnp.float32)
                    .at[:, :CLASS_NUM].set(cls_w).astype(jnp.bfloat16),
        'cls_b': jnp.full((1, CLASS_PAD), NEG_INF, jnp.float32)
                    .at[:, :CLASS_NUM].set(0.0),
    }
    return params


if __name__ == "__main__":
    root = jax.random.PRNGKey(0)
    pkey, xkey, tkey = jax.random.split(root, 3)

    params = init_params(pkey)
    x = jax.random.randint(xkey, (BATCH, SEQ), 0, VOCAB, dtype=jnp.int32)
    target = jax.random.randint(tkey, (BATCH, SEQ), 0, CLASS_NUM, dtype=jnp.int32)
    target = target.at[:, -2:].set(-1)          # some ignored (padding) labels

    predict = torch_model_forward(params, x)            # (B, S, CLASS_NUM)
    loss = torch_model_forward(params, x, target)       # scalar loss

    jax.block_until_ready((predict, loss))
    assert predict.shape == (BATCH, SEQ, CLASS_NUM)
    assert loss.shape == ()
    assert bool(jnp.isfinite(loss))
    print("KERNEL_OK")
</pallas_src>

<mosaic_0001>
module attributes {stable_mosaic.version = 11 : i64} {
  func.func @predict_kernel(%arg0: i32, %arg1: i32, %arg2: memref<16x128xf32, #tpu.memory_space<vmem>>, %arg3: memref<1x128xf32, #tpu.memory_space<vmem>>, %arg4: memref<1x128xf32, #tpu.memory_space<vmem>>, %arg5: memref<1x128x384xbf16, #tpu.memory_space<vmem>>, %arg6: memref<1x1x384xf32, #tpu.memory_space<vmem>>, %arg7: memref<1x4x32x128xbf16, #tpu.memory_space<vmem>>, %arg8: memref<1x1x128xf32, #tpu.memory_space<vmem>>, %arg9: memref<1x1x128xf32, #tpu.memory_space<vmem>>, %arg10: memref<1x1x128xf32, #tpu.memory_space<vmem>>, %arg11: memref<1x128x256xbf16, #tpu.memory_space<vmem>>, %arg12: memref<1x1x256xf32, #tpu.memory_space<vmem>>, %arg13: memref<1x256x128xbf16, #tpu.memory_space<vmem>>, %arg14: memref<1x1x128xf32, #tpu.memory_space<vmem>>, %arg15: memref<1x1x128xf32, #tpu.memory_space<vmem>>, %arg16: memref<1x1x128xf32, #tpu.memory_space<vmem>>, %arg17: memref<128x128xbf16, #tpu.memory_space<vmem>>, %arg18: memref<1x128xf32, #tpu.memory_space<vmem>>, %arg19: memref<16x128xf32, #tpu.memory_space<vmem>>, %arg20: memref<16x128xf32, #tpu.memory_space<vmem>>) attributes {dimension_semantics = [#tpu.dimension_semantics<parallel>, #tpu.dimension_semantics<arbitrary>], iteration_bounds = array<i64: 2, 2>, scalar_prefetch = 0 : i64, scratch_operands = 1 : i64, tpu.core_type = #tpu.core_type<tc>, window_params = [{transform_indices = @transform_0, window_bounds = array<i64: 16, 128>}, {pipeline_mode = #tpu.pipeline_mode<synchronous>, transform_indices = @transform_1, window_bounds = array<i64: 1, 128>}, {pipeline_mode = #tpu.pipeline_mode<synchronous>, transform_indices = @transform_2, window_bounds = array<i64: 1, 128>}, {transform_indices = @transform_3, window_bounds = array<i64: 1, 128, 384>}, {transform_indices = @transform_4, window_bounds = array<i64: 1, 1, 384>}, {transform_indices = @transform_5, window_bounds = array<i64: 1, 4, 32, 128>}, {transform_indices = @transform_6, window_bounds = array<i64: 1, 1, 128>}, {transform_indices = @transform_7, window_bounds = array<i64: 1, 1, 128>}, {transform_indices = @transform_8, window_bounds = array<i64: 1, 1, 128>}, {transform_indices = @transform_9, window_bounds = array<i64: 1, 128, 256>}, {transform_indices = @transform_10, window_bounds = array<i64: 1, 1, 256>}, {transform_indices = @transform_11, window_bounds = array<i64: 1, 256, 128>}, {transform_indices = @transform_12, window_bounds = array<i64: 1, 1, 128>}, {transform_indices = @transform_13, window_bounds = array<i64: 1, 1, 128>}, {transform_indices = @transform_14, window_bounds = array<i64: 1, 1, 128>}, {pipeline_mode = #tpu.pipeline_mode<synchronous>, transform_indices = @transform_15, window_bounds = array<i64: 128, 128>}, {pipeline_mode = #tpu.pipeline_mode<synchronous>, transform_indices = @transform_16, window_bounds = array<i64: 1, 128>}, {transform_indices = @transform_17, window_bounds = array<i64: 16, 128>}]} {
    %c0_i32 = arith.constant 0 : i32
    %0 = arith.cmpi eq, %arg1, %c0_i32 : i32
    %1 = arith.extui %0 : i1 to i32
    %c0_i32_0 = arith.constant 0 : i32
    %2 = arith.cmpi ne, %1, %c0_i32_0 : i32
    scf.if %2 {
      %c0_87 = arith.constant 0 : index
      %c0_88 = arith.constant 0 : index
      %201 = vector.load %arg2[%c0_87, %c0_88] : memref<16x128xf32, #tpu.memory_space<vmem>>, vector<16x128xf32>
      %c0_89 = arith.constant 0 : index
      %c0_90 = arith.constant 0 : index
      %202 = vector.load %arg3[%c0_89, %c0_90] : memref<1x128xf32, #tpu.memory_space<vmem>>, vector<1x128xf32>
      %c0_91 = arith.constant 0 : index
      %c0_92 = arith.constant 0 : index
      %203 = vector.load %arg4[%c0_91, %c0_92] : memref<1x128xf32, #tpu.memory_space<vmem>>, vector<1x128xf32>
      %cst_93 = arith.constant dense<0.000000e+00> : vector<16xf32>
      %204 = vector.multi_reduction <add>, %201, %cst_93 [1] : vector<16x128xf32> to vector<16xf32>
      %205 = vector.shape_cast %204 : vector<16xf32> to vector<16x1xf32>
      %cst_94 = arith.constant 1.280000e+02 : f32
      %206 = vector.broadcast %cst_94 : f32 to vector<16x1xf32>
      %207 = arith.divf %205, %206 : vector<16x1xf32>
      %208 = vector.broadcast %207 : vector<16x1xf32> to vector<16x128xf32>
      %209 = arith.subf %201, %208 : vector<16x128xf32>
      %210 = arith.mulf %209, %209 : vector<16x128xf32>
      %cst_95 = arith.constant dense<0.000000e+00> : vector<16xf32>
      %211 = vector.multi_reduction <add>, %210, %cst_95 [1] : vector<16x128xf32> to vector<16xf32>
      %212 = vector.shape_cast %211 : vector<16xf32> to vector<16x1xf32>
      %cst_96 = arith.constant 1.280000e+02 : f32
      %213 = vector.broadcast %cst_96 : f32 to vector<16x1xf32>
      %214 = arith.divf %212, %213 : vector<16x1xf32>
      %215 = vector.broadcast %207 : vector<16x1xf32> to vector<16x128xf32>
      %216 = arith.subf %201, %215 : vector<16x128xf32>
      %cst_97 = arith.constant 9.99999996E-13 : f32
      %217 = vector.broadcast %cst_97 : f32 to vector<16x1xf32>
      %218 = arith.addf %214, %217 : vector<16x1xf32>
      %219 = math.rsqrt %218 : vector<16x1xf32>
      %220 = vector.broadcast %219 : vector<16x1xf32> to vector<16x128xf32>
      %221 = arith.mulf %216, %220 : vector<16x128xf32>
      %222 = vector.broadcast %202 : vector<1x128xf32> to vector<16x128xf32>
      %223 = arith.mulf %221, %222 : vector<16x128xf32>
      %224 = vector.broadcast %203 : vector<1x128xf32> to vector<16x128xf32>
      %225 = arith.addf %223, %224 : vector<16x128xf32>
      %c0_98 = arith.constant 0 : index
      %c0_99 = arith.constant 0 : index
      %226 = vector.load %arg20[%c0_98, %c0_99] : memref<16x128xf32, #tpu.memory_space<vmem>>, vector<16x128xf32>
      tpu.vector_store %arg20[%c0_98, %c0_99], %225 {strides = array<i32>} : memref<16x128xf32, #tpu.memory_space<vmem>>, vector<16x128xf32>,
    } else {
    }
    %c0 = arith.constant 0 : index
    %c0_1 = arith.constant 0 : index
    %3 = vector.load %arg20[%c0, %c0_1] : memref<16x128xf32, #tpu.memory_space<vmem>>, vector<16x128xf32>
    %4 = arith.truncf %3 : vector<16x128xf32> to vector<16x128xbf16>
    %c0_2 = arith.constant 0 : index
    %c0_3 = arith.constant 0 : index
    %c0_4 = arith.constant 0 : index
    %5 = vector.load %arg5[%c0_2, %c0_3, %c0_4] : memref<1x128x384xbf16, #tpu.memory_space<vmem>>, vector<1x128x384xbf16>
    %6 = vector.shape_cast %5 : vector<1x128x384xbf16> to vector<128x384xbf16>
    %cst = arith.constant dense<0.000000e+00> : vector<16x384xf32>
    %7 = tpu.matmul %4, %6, %cst {dimension_numbers = #tpu.dot_dimension_numbers<[1], [0], [0], [1], [0, 0, 1, 1], [], []>} : vector<16x128xbf16>, vector<128x384xbf16>, vector<16x384xf32> -> vector<16x384xf32>
    %c0_5 = arith.constant 0 : index
    %c0_6 = arith.constant 0 : index
    %c0_7 = arith.constant 0 : index
    %8 = vector.load %arg6[%c0_5, %c0_6, %c0_7] : memref<1x1x384xf32, #tpu.memory_space<vmem>>, vector<1x1x384xf32>
    %9 = vector.shape_cast %8 : vector<1x1x384xf32> to vector<1x384xf32>
    %10 = vector.broadcast %9 : vector<1x384xf32> to vector<16x384xf32>
    %11 = arith.addf %7, %10 : vector<16x384xf32>
    %12 = vector.extract_strided_slice %11 {offsets = [0, 0], sizes = [16, 128], strides = [1, 1]} : vector<16x384xf32> to vector<16x128xf32>
    %13 = vector.extract_strided_slice %11 {offsets = [0, 128], sizes = [16, 128], strides = [1, 1]} : vector<16x384xf32> to vector<16x128xf32>
    %14 = vector.extract_strided_slice %11 {offsets = [0, 256], sizes = [16, 128], strides = [1, 1]} : vector<16x384xf32> to vector<16x128xf32>
    %15 = vector.extract_strided_slice %12 {offsets = [0, 0], sizes = [16, 32], strides = [1, 1]} : vector<16x128xf32> to vector<16x32xf32>
    %16 = arith.truncf %15 : vector<16x32xf32> to vector<16x32xbf16>
    %17 = vector.extract_strided_slice %13 {offsets = [0, 0], sizes = [16, 32], strides = [1, 1]} : vector<16x128xf32> to vector<16x32xf32>
    %18 = arith.truncf %17 : vector<16x32xf32> to vector<16x32xbf16>
    %19 = vector.extract_strided_slice %14 {offsets = [0, 0], sizes = [16, 32], strides = [1, 1]} : vector<16x128xf32> to vector<16x32xf32>
    %20 = arith.truncf %19 : vector<16x32xf32> to vector<16x32xbf16>
    "tpu.trace_start"() <{level = 10 : i32, message = "qd,kd->qk"}> : () -> ()
    %cst_8 = arith.constant dense<0.000000e+00> : vector<16x16xf32>
    %21 = tpu.matmul %16, %18, %cst_8 {dimension_numbers = #tpu.dot_dimension_numbers<[1], [1], [0], [0], [0, 0, 1, 0], [], []>} : vector<16x32xbf16>, vector<16x32xbf16>, vector<16x16xf32> -> vector<16x16xf32>
    "tpu.trace_stop"() : () -> ()
    %cst_9 = arith.constant dense<0xFF800000> : vector<16xf32>
    %22 = vector.multi_reduction <maximumf>, %21, %cst_9 [1] : vector<16x16xf32> to vector<16xf32>
    %23 = vector.shape_cast %22 : vector<16xf32> to vector<16x1xf32>
    %24 = vector.broadcast %23 : vector<16x1xf32> to vector<16x16xf32>
    %25 = arith.subf %21, %24 : vector<16x16xf32>
    %26 = math.exp %25 : vector<16x16xf32>
    %cst_10 = arith.constant dense<0.000000e+00> : vector<16xf32>
    %27 = vector.multi_reduction <add>, %26, %cst_10 [1] : vector<16x16xf32> to vector<16xf32>
    %28 = vector.shape_cast %27 : vector<16xf32> to vector<16x1xf32>
    %29 = tpu.reciprocal %28 {approx = true} : vector<16x1xf32> -> vector<16x1xf32>
    %30 = vector.broadcast %29 : vector<16x1xf32> to vector<16x16xf32>
    %31 = arith.mulf %26, %30 : vector<16x16xf32>
    %32 = arith.truncf %31 : vector<16x16xf32> to vector<16x16xbf16>
    %cst_11 = arith.constant dense<0.000000e+00> : vector<16x32xf32>
    %33 = tpu.matmul %32, %20, %cst_11 {dimension_numbers = #tpu.dot_dimension_numbers<[1], [0], [0], [1], [0, 0, 1, 1], [], []>} : vector<16x16xbf16>, vector<16x32xbf16>, vector<16x32xf32> -> vector<16x32xf32>
    %34 = arith.truncf %33 : vector<16x32xf32> to vector<16x32xbf16>
    %c0_12 = arith.constant 0 : index
    %c0_13 = arith.constant 0 : index
    %c0_14 = arith.constant 0 : index
    %c0_15 = arith.constant 0 : index
    %35 = vector.load %arg7[%c0_12, %c0_13, %c0_14, %c0_15] : memref<1x4x32x128xbf16, #tpu.memory_space<vmem>>, vector<1x1x32x128xbf16>
    %36 = vector.shape_cast %35 : vector<1x1x32x128xbf16> to vector<32x128xbf16>
    %cst_16 = arith.constant dense<0.000000e+00> : vector<16x128xf32>
    %37 = tpu.matmul %34, %36, %cst_16 {dimension_numbers = #tpu.dot_dimension_numbers<[1], [0], [0], [1], [0, 0, 1, 1], [], []>} : vector<16x32xbf16>, vector<32x128xbf16>, vector<16x128xf32> -> vector<16x128xf32>
    %38 = vector.extract_strided_slice %12 {offsets = [0, 32], sizes = [16, 32], strides = [1, 1]} : vector<16x128xf32> to vector<16x32xf32>
    %39 = arith.truncf %38 : vector<16x32xf32> to vector<16x32xbf16>
    %40 = vector.extract_strided_slice %13 {offsets = [0, 32], sizes = [16, 32], strides = [1, 1]} : vector<16x128xf32> to vector<16x32xf32>
    %41 = arith.truncf %40 : vector<16x32xf32> to vector<16x32xbf16>
    %42 = vector.extract_strided_slice %14 {offsets = [0, 32], sizes = [16, 32], strides = [1, 1]} : vector<16x128xf32> to vector<16x32xf32>
    %43 = arith.truncf %42 : vector<16x32xf32> to vector<16x32xbf16>
    "tpu.trace_start"() <{level = 10 : i32, message = "qd,kd->qk"}> : () -> ()
    %cst_17 = arith.constant dense<0.000000e+00> : vector<16x16xf32>
    %44 = tpu.matmul %39, %41, %cst_17 {dimension_numbers = #tpu.dot_dimension_numbers<[1], [1], [0], [0], [0, 0, 1, 0], [], []>} : vector<16x32xbf16>, vector<16x32xbf16>, vector<16x16xf32> -> vector<16x16xf32>
    "tpu.trace_stop"() : () -> ()
    %cst_18 = arith.constant dense<0xFF800000> : vector<16xf32>
    %45 = vector.multi_reduction <maximumf>, %44, %cst_18 [1] : vector<16x16xf32> to vector<16xf32>
    %46 = vector.shape_cast %45 : vector<16xf32> to vector<16x1xf32>
    %47 = vector.broadcast %46 : vector<16x1xf32> to vector<16x16xf32>
    %48 = arith.subf %44, %47 : vector<16x16xf32>
    %49 = math.exp %48 : vector<16x16xf32>
    %cst_19 = arith.constant dense<0.000000e+00> : vector<16xf32>
    %50 = vector.multi_reduction <add>, %49, %cst_19 [1] : vector<16x16xf32> to vector<16xf32>
    %51 = vector.shape_cast %50 : vector<16xf32> to vector<16x1xf32>
    %52 = tpu.reciprocal %51 {approx = true} : vector<16x1xf32> -> vector<16x1xf32>
    %53 = vector.broadcast %52 : vector<16x1xf32> to vector<16x16xf32>
    %54 = arith.mulf %49, %53 : vector<16x16xf32>
    %55 = arith.truncf %54 : vector<16x16xf32> to vector<16x16xbf16>
    %cst_20 = arith.constant dense<0.000000e+00> : vector<16x32xf32>
    %56 = tpu.matmul %55, %43, %cst_20 {dimension_numbers = #tpu.dot_dimension_numbers<[1], [0], [0], [1], [0, 0, 1, 1], [], []>} : vector<16x16xbf16>, vector<16x32xbf16>, vector<16x32xf32> -> vector<16x32xf32>
    %57 = arith.truncf %56 : vector<16x32xf32> to vector<16x32xbf16>
    %c0_21 = arith.constant 0 : index
    %c1 = arith.constant 1 : index
    %c0_22 = arith.constant 0 : index
    %c0_23 = arith.constant 0 : index
    %58 = vector.load %arg7[%c0_21, %c1, %c0_22, %c0_23] : memref<1x4x32x128xbf16, #tpu.memory_space<vmem>>, vector<1x1x32x128xbf16>
    %59 = vector.shape_cast %58 : vector<1x1x32x128xbf16> to vector<32x128xbf16>
    %cst_24 = arith.constant dense<0.000000e+00> : vector<16x128xf32>
    %60 = tpu.matmul %57, %59, %cst_24 {dimension_numbers = #tpu.dot_dimension_numbers<[1], [0], [0], [1], [0, 0, 1, 1], [], []>} : vector<16x32xbf16>, vector<32x128xbf16>, vector<16x128xf32> -> vector<16x128xf32>
    %61 = arith.addf %37, %60 : vector<16x128xf32>
    %62 = vector.extract_strided_slice %12 {offsets = [0, 64], sizes = [16, 32], strides = [1, 1]} : vector<16x128xf32> to vector<16x32xf32>
    %63 = arith.truncf %62 : vector<16x32xf32> to vector<16x32xbf16>
    %64 = vector.extract_strided_slice %13 {offsets = [0, 64], sizes = [16, 32], strides = [1, 1]} : vector<16x128xf32> to vector<16x32xf32>
    %65 = arith.truncf %64 : vector<16x32xf32> to vector<16x32xbf16>
    %66 = vector.extract_strided_slice %14 {offsets = [0, 64], sizes = [16, 32], strides = [1, 1]} : vector<16x128xf32> to vector<16x32xf32>
    %67 = arith.truncf %66 : vector<16x32xf32> to vector<16x32xbf16>
    "tpu.trace_start"() <{level = 10 : i32, message = "qd,kd->qk"}> : () -> ()
    %cst_25 = arith.constant dense<0.000000e+00> : vector<16x16xf32>
    %68 = tpu.matmul %63, %65, %cst_25 {dimension_numbers = #tpu.dot_dimension_numbers<[1], [1], [0], [0], [0, 0, 1, 0], [], []>} : vector<16x32xbf16>, vector<16x32xbf16>, vector<16x16xf32> -> vector<16x16xf32>
    "tpu.trace_stop"() : () -> ()
    %cst_26 = arith.constant dense<0xFF800000> : vector<16xf32>
    %69 = vector.multi_reduction <maximumf>, %68, %cst_26 [1] : vector<16x16xf32> to vector<16xf32>
    %70 = vector.shape_cast %69 : vector<16xf32> to vector<16x1xf32>
    %71 = vector.broadcast %70 : vector<16x1xf32> to vector<16x16xf32>
    %72 = arith.subf %68, %71 : vector<16x16xf32>
    %73 = math.exp %72 : vector<16x16xf32>
    %cst_27 = arith.constant dense<0.000000e+00> : vector<16xf32>
    %74 = vector.multi_reduction <add>, %73, %cst_27 [1] : vector<16x16xf32> to vector<16xf32>
    %75 = vector.shape_cast %74 : vector<16xf32> to vector<16x1xf32>
    %76 = tpu.reciprocal %75 {approx = true} : vector<16x1xf32> -> vector<16x1xf32>
    %77 = vector.broadcast %76 : vector<16x1xf32> to vector<16x16xf32>
    %78 = arith.mulf %73, %77 : vector<16x16xf32>
    %79 = arith.truncf %78 : vector<16x16xf32> to vector<16x16xbf16>
    %cst_28 = arith.constant dense<0.000000e+00> : vector<16x32xf32>
    %80 = tpu.matmul %79, %67, %cst_28 {dimension_numbers = #tpu.dot_dimension_numbers<[1], [0], [0], [1], [0, 0, 1, 1], [], []>} : vector<16x16xbf16>, vector<16x32xbf16>, vector<16x32xf32> -> vector<16x32xf32>
    %81 = arith.truncf %80 : vector<16x32xf32> to vector<16x32xbf16>
    %c0_29 = arith.constant 0 : index
    %c2 = arith.constant 2 : index
    %c0_30 = arith.constant 0 : index
    %c0_31 = arith.constant 0 : index
    %82 = vector.load %arg7[%c0_29, %c2, %c0_30, %c0_31] : memref<1x4x32x128xbf16, #tpu.memory_space<vmem>>, vector<1x1x32x128xbf16>
    %83 = vector.shape_cast %82 : vector<1x1x32x128xbf16> to vector<32x128xbf16>
    %cst_32 = arith.constant dense<0.000000e+00> : vector<16x128xf32>
    %84 = tpu.matmul %81, %83, %cst_32 {dimension_numbers = #tpu.dot_dimension_numbers<[1], [0], [0], [1], [0, 0, 1, 1], [], []>} : vector<16x32xbf16>, vector<32x128xbf16>, vector<16x128xf32> -> vector<16x128xf32>
    %85 = arith.addf %61, %84 : vector<16x128xf32>
    %86 = vector.extract_strided_slice %12 {offsets = [0, 96], sizes = [16, 32], strides = [1, 1]} : vector<16x128xf32> to vector<16x32xf32>
    %87 = arith.truncf %86 : vector<16x32xf32> to vector<16x32xbf16>
    %88 = vector.extract_strided_slice %13 {offsets = [0, 96], sizes = [16, 32], strides = [1, 1]} : vector<16x128xf32> to vector<16x32xf32>
    %89 = arith.truncf %88 : vector<16x32xf32> to vector<16x32xbf16>
    %90 = vector.extract_strided_slice %14 {offsets = [0, 96], sizes = [16, 32], strides = [1, 1]} : vector<16x128xf32> to vector<16x32xf32>
    %91 = arith.truncf %90 : vector<16x32xf32> to vector<16x32xbf16>
    "tpu.trace_start"() <{level = 10 : i32, message = "qd,kd->qk"}> : () -> ()
    %cst_33 = arith.constant dense<0.000000e+00> : vector<16x16xf32>
    %92 = tpu.matmul %87, %89, %cst_33 {dimension_numbers = #tpu.dot_dimension_numbers<[1], [1], [0], [0], [0, 0, 1, 0], [], []>} : vector<16x32xbf16>, vector<16x32xbf16>, vector<16x16xf32> -> vector<16x16xf32>
    "tpu.trace_stop"() : () -> ()
    %cst_34 = arith.constant dense<0xFF800000> : vector<16xf32>
    %93 = vector.multi_reduction <maximumf>, %92, %cst_34 [1] : vector<16x16xf32> to vector<16xf32>
    %94 = vector.shape_cast %93 : vector<16xf32> to vector<16x1xf32>
    %95 = vector.broadcast %94 : vector<16x1xf32> to vector<16x16xf32>
    %96 = arith.subf %92, %95 : vector<16x16xf32>
    %97 = math.exp %96 : vector<16x16xf32>
    %cst_35 = arith.constant dense<0.000000e+00> : vector<16xf32>
    %98 = vector.multi_reduction <add>, %97, %cst_35 [1] : vector<16x16xf32> to vector<16xf32>
    %99 = vector.shape_cast %98 : vector<16xf32> to vector<16x1xf32>
    %100 = tpu.reciprocal %99 {approx = true} : vector<16x1xf32> -> vector<16x1xf32>
    %101 = vector.broadcast %100 : vector<16x1xf32> to vector<16x16xf32>
    %102 = arith.mulf %97, %101 : vector<16x16xf32>
    %103 = arith.truncf %102 : vector<16x16xf32> to vector<16x16xbf16>
    %cst_36 = arith.constant dense<0.000000e+00> : vector<16x32xf32>
    %104 = tpu.matmul %103, %91, %cst_36 {dimension_numbers = #tpu.dot_dimension_numbers<[1], [0], [0], [1], [0, 0, 1, 1], [], []>} : vector<16x16xbf16>, vector<16x32xbf16>, vector<16x32xf32> -> vector<16x32xf32>
    %105 = arith.truncf %104 : vector<16x32xf32> to vector<16x32xbf16>
    %c0_37 = arith.constant 0 : index
    %c3 = arith.constant 3 : index
    %c0_38 = arith.constant 0 : index
    %c0_39 = arith.constant 0 : index
    %106 = vector.load %arg7[%c0_37, %c3, %c0_38, %c0_39] : memref<1x4x32x128xbf16, #tpu.memory_space<vmem>>, vector<1x1x32x128xbf16>
    %107 = vector.shape_cast %106 : vector<1x1x32x128xbf16> to vector<32x128xbf16>
    %cst_40 = arith.constant dense<0.000000e+00> : vector<16x128xf32>
    %108 = tpu.matmul %105, %107, %cst_40 {dimension_numbers = #tpu.dot_dimension_numbers<[1], [0], [0], [1], [0, 0, 1, 1], [], []>} : vector<16x32xbf16>, vector<32x128xbf16>, vector<16x128xf32> -> vector<16x128xf32>
    %109 = arith.addf %85, %108 : vector<16x128xf32>
    %c0_41 = arith.constant 0 : index
    %c0_42 = arith.constant 0 : index
    %c0_43 = arith.constant 0 : index
    %110 = vector.load %arg8[%c0_41, %c0_42, %c0_43] : memref<1x1x128xf32, #tpu.memory_space<vmem>>, vector<1x1x128xf32>
    %111 = vector.shape_cast %110 : vector<1x1x128xf32> to vector<1x128xf32>
    %112 = vector.broadcast %111 : vector<1x128xf32> to vector<16x128xf32>
    %113 = arith.addf %109, %112 : vector<16x128xf32>
    %114 = arith.addf %3, %113 : vector<16x128xf32>
    %c0_44 = arith.constant 0 : index
    %c0_45 = arith.constant 0 : index
    %c0_46 = arith.constant 0 : index
    %115 = vector.load %arg9[%c0_44, %c0_45, %c0_46] : memref<1x1x128xf32, #tpu.memory_space<vmem>>, vector<1x1x128xf32>
    %116 = vector.shape_cast %115 : vector<1x1x128xf32> to vector<1x128xf32>
    %c0_47 = arith.constant 0 : index
    %c0_48 = arith.constant 0 : index
    %c0_49 = arith.constant 0 : index
    %117 = vector.load %arg10[%c0_47, %c0_48, %c0_49] : memref<1x1x128xf32, #tpu.memory_space<vmem>>, vector<1x1x128xf32>
    %118 = vector.shape_cast %117 : vector<1x1x128xf32> to vector<1x128xf32>
    %cst_50 = arith.constant dense<0.000000e+00> : vector<16xf32>
    %119 = vector.multi_reduction <add>, %114, %cst_50 [1] : vector<16x128xf32> to vector<16xf32>
    %120 = vector.shape_cast %119 : vector<16xf32> to vector<16x1xf32>
    %cst_51 = arith.constant 1.280000e+02 : f32
    %121 = vector.broadcast %cst_51 : f32 to vector<16x1xf32>
    %122 = arith.divf %120, %121 : vector<16x1xf32>
    %123 = vector.broadcast %122 : vector<16x1xf32> to vector<16x128xf32>
    %124 = arith.subf %114, %123 : vector<16x128xf32>
    %125 = arith.mulf %124, %124 : vector<16x128xf32>
    %cst_52 = arith.constant dense<0.000000e+00> : vector<16xf32>
    %126 = vector.multi_reduction <add>, %125, %cst_52 [1] : vector<16x128xf32> to vector<16xf32>
    %127 = vector.shape_cast %126 : vector<16xf32> to vector<16x1xf32>
    %cst_53 = arith.constant 1.280000e+02 : f32
    %128 = vector.broadcast %cst_53 : f32 to vector<16x1xf32>
    %129 = arith.divf %127, %128 : vector<16x1xf32>
    %130 = vector.broadcast %122 : vector<16x1xf32> to vector<16x128xf32>
    %131 = arith.subf %114, %130 : vector<16x128xf32>
    %cst_54 = arith.constant 9.99999996E-13 : f32
    %132 = vector.broadcast %cst_54 : f32 to vector<16x1xf32>
    %133 = arith.addf %129, %132 : vector<16x1xf32>
    %134 = math.rsqrt %133 : vector<16x1xf32>
    %135 = vector.broadcast %134 : vector<16x1xf32> to vector<16x128xf32>
    %136 = arith.mulf %131, %135 : vector<16x128xf32>
    %137 = vector.broadcast %116 : vector<1x128xf32> to vector<16x128xf32>
    %138 = arith.mulf %136, %137 : vector<16x128xf32>
    %139 = vector.broadcast %118 : vector<1x128xf32> to vector<16x128xf32>
    %140 = arith.addf %138, %139 : vector<16x128xf32>
    %141 = arith.truncf %140 : vector<16x128xf32> to vector<16x128xbf16>
    %c0_55 = arith.constant 0 : index
    %c0_56 = arith.constant 0 : index
    %c0_57 = arith.constant 0 : index
    %142 = vector.load %arg11[%c0_55, %c0_56, %c0_57] : memref<1x128x256xbf16, #tpu.memory_space<vmem>>, vector<1x128x256xbf16>
    %143 = vector.shape_cast %142 : vector<1x128x256xbf16> to vector<128x256xbf16>
    %cst_58 = arith.constant dense<0.000000e+00> : vector<16x256xf32>
    %144 = tpu.matmul %141, %143, %cst_58 {dimension_numbers = #tpu.dot_dimension_numbers<[1], [0], [0], [1], [0, 0, 1, 1], [], []>} : vector<16x128xbf16>, vector<128x256xbf16>, vector<16x256xf32> -> vector<16x256xf32>
    %c0_59 = arith.constant 0 : index
    %c0_60 = arith.constant 0 : index
    %c0_61 = arith.constant 0 : index
    %145 = vector.load %arg12[%c0_59, %c0_60, %c0_61] : memref<1x1x256xf32, #tpu.memory_space<vmem>>, vector<1x1x256xf32>
    %146 = vector.shape_cast %145 : vector<1x1x256xf32> to vector<1x256xf32>
    %147 = vector.broadcast %146 : vector<1x256xf32> to vector<16x256xf32>
    %148 = arith.addf %144, %147 : vector<16x256xf32>
    %149 = arith.mulf %148, %148 : vector<16x256xf32>
    %150 = arith.mulf %148, %149 : vector<16x256xf32>
    %cst_62 = arith.constant 4.471500e-02 : f32
    %151 = vector.broadcast %cst_62 : f32 to vector<16x256xf32>
    %152 = arith.mulf %151, %150 : vector<16x256xf32>
    %153 = arith.addf %148, %152 : vector<16x256xf32>
    %cst_63 = arith.constant 0.797884583 : f32
    %154 = vector.broadcast %cst_63 : f32 to vector<16x256xf32>
    %155 = arith.mulf %154, %153 : vector<16x256xf32>
    %156 = math.tanh %155 : vector<16x256xf32>
    %cst_64 = arith.constant 1.000000e+00 : f32
    %157 = vector.broadcast %cst_64 : f32 to vector<16x256xf32>
    %158 = arith.addf %157, %156 : vector<16x256xf32>
    %cst_65 = arith.constant 5.000000e-01 : f32
    %159 = vector.broadcast %cst_65 : f32 to vector<16x256xf32>
    %160 = arith.mulf %159, %158 : vector<16x256xf32>
    %161 = arith.mulf %148, %160 : vector<16x256xf32>
    %162 = arith.truncf %161 : vector<16x256xf32> to vector<16x256xbf16>
    %c0_66 = arith.constant 0 : index
    %c0_67 = arith.constant 0 : index
    %c0_68 = arith.constant 0 : index
    %163 = vector.load %arg13[%c0_66, %c0_67, %c0_68] : memref<1x256x128xbf16, #tpu.memory_space<vmem>>, vector<1x256x128xbf16>
    %164 = vector.shape_cast %163 : vector<1x256x128xbf16> to vector<256x128xbf16>
    %cst_69 = arith.constant dense<0.000000e+00> : vector<16x128xf32>
    %165 = tpu.matmul %162, %164, %cst_69 {dimension_numbers = #tpu.dot_dimension_numbers<[1], [0], [0], [1], [0, 0, 1, 1], [], []>} : vector<16x256xbf16>, vector<256x128xbf16>, vector<16x128xf32> -> vector<16x128xf32>
    %c0_70 = arith.constant 0 : index
    %c0_71 = arith.constant 0 : index
    %c0_72 = arith.constant 0 : index
    %166 = vector.load %arg14[%c0_70, %c0_71, %c0_72] : memref<1x1x128xf32, #tpu.memory_space<vmem>>, vector<1x1x128xf32>
    %167 = vector.shape_cast %166 : vector<1x1x128xf32> to vector<1x128xf32>
    %168 = vector.broadcast %167 : vector<1x128xf32> to vector<16x128xf32>
    %169 = arith.addf %165, %168 : vector<16x128xf32>
    %170 = arith.addf %140, %169 : vector<16x128xf32>
    %c0_73 = arith.constant 0 : index
    %c0_74 = arith.constant 0 : index
    %c0_75 = arith.constant 0 : index
    %171 = vector.load %arg15[%c0_73, %c0_74, %c0_75] : memref<1x1x128xf32, #tpu.memory_space<vmem>>, vector<1x1x128xf32>
    %172 = vector.shape_cast %171 : vector<1x1x128xf32> to vector<1x128xf32>
    %c0_76 = arith.constant 0 : index
    %c0_77 = arith.constant 0 : index
    %c0_78 = arith.constant 0 : index
    %173 = vector.load %arg16[%c0_76, %c0_77, %c0_78] : memref<1x1x128xf32, #tpu.memory_space<vmem>>, vector<1x1x128xf32>
    %174 = vector.shape_cast %173 : vector<1x1x128xf32> to vector<1x128xf32>
    %cst_79 = arith.constant dense<0.000000e+00> : vector<16xf32>
    %175 = vector.multi_reduction <add>, %170, %cst_79 [1] : vector<16x128xf32> to vector<16xf32>
    %176 = vector.shape_cast %175 : vector<16xf32> to vector<16x1xf32>
    %cst_80 = arith.constant 1.280000e+02 : f32
    %177 = vector.broadcast %cst_80 : f32 to vector<16x1xf32>
    %178 = arith.divf %176, %177 : vector<16x1xf32>
    %179 = vector.broadcast %178 : vector<16x1xf32> to vector<16x128xf32>
    %180 = arith.subf %170, %179 : vector<16x128xf32>
    %181 = arith.mulf %180, %180 : vector<16x128xf32>
    %cst_81 = arith.constant dense<0.000000e+00> : vector<16xf32>
    %182 = vector.multi_reduction <add>, %181, %cst_81 [1] : vector<16x128xf32> to vector<16xf32>
    %183 = vector.shape_cast %182 : vector<16xf32> to vector<16x1xf32>
    %cst_82 = arith.constant 1.280000e+02 : f32
    %184 = vector.broadcast %cst_82 : f32 to vector<16x1xf32>
    %185 = arith.divf %183, %184 : vector<16x1xf32>
    %186 = vector.broadcast %178 : vector<16x1xf32> to vector<16x128xf32>
    %187 = arith.subf %170, %186 : vector<16x128xf32>
    %cst_83 = arith.constant 9.99999996E-13 : f32
    %188 = vector.broadcast %cst_83 : f32 to vector<16x1xf32>
    %189 = arith.addf %185, %188 : vector<16x1xf32>
    %190 = math.rsqrt %189 : vector<16x1xf32>
    %191 = vector.broadcast %190 : vector<16x1xf32> to vector<16x128xf32>
    %192 = arith.mulf %187, %191 : vector<16x128xf32>
    %193 = vector.broadcast %172 : vector<1x128xf32> to vector<16x128xf32>
    %194 = arith.mulf %192, %193 : vector<16x128xf32>
    %195 = vector.broadcast %174 : vector<1x128xf32> to vector<16x128xf32>
    %196 = arith.addf %194, %195 : vector<16x128xf32>
    %c0_84 = arith.constant 0 : index
    %c0_85 = arith.constant 0 : index
    %197 = vector.load %arg20[%c0_84, %c0_85] : memref<16x128xf32, #tpu.memory_space<vmem>>, vector<16x128xf32>
    tpu.vector_store %arg20[%c0_84, %c0_85], %196 {strides = array<i32>} : memref<16x128xf32, #tpu.memory_space<vmem>>, vector<16x128xf32>,
    %c1_i32 = arith.constant 1 : i32
    %198 = arith.cmpi eq, %arg1, %c1_i32 : i32
    %199 = arith.extui %198 : i1 to i32
    %c0_i32_86 = arith.constant 0 : i32
    %200 = arith.cmpi ne, %199, %c0_i32_86 : i32
    scf.if %200 {
      %c0_87 = arith.constant 0 : index
      %c0_88 = arith.constant 0 : index
      %201 = vector.load %arg20[%c0_87, %c0_88] : memref<16x128xf32, #tpu.memory_space<vmem>>, vector<16x128xf32>
      %202 = arith.truncf %201 : vector<16x128xf32> to vector<16x128xbf16>
      %c0_89 = arith.constant 0 : index
      %c0_90 = arith.constant 0 : index
      %203 = vector.load %arg17[%c0_89, %c0_90] : memref<128x128xbf16, #tpu.memory_space<vmem>>, vector<128x128xbf16>
      %cst_91 = arith.constant dense<0.000000e+00> : vector<16x128xf32>
      %204 = tpu.matmul %202, %203, %cst_91 {dimension_numbers = #tpu.dot_dimension_numbers<[1], [0], [0], [1], [0, 0, 1, 1], [], []>} : vector<16x128xbf16>, vector<128x128xbf16>, vector<16x128xf32> -> vector<16x128xf32>
      %c0_92 = arith.constant 0 : index
      %c0_93 = arith.constant 0 : index
      %205 = vector.load %arg18[%c0_92, %c0_93] : memref<1x128xf32, #tpu.memory_space<vmem>>, vector<1x128xf32>
      %206 = vector.broadcast %205 : vector<1x128xf32> to vector<16x128xf32>
      %207 = arith.addf %204, %206 : vector<16x128xf32>
      %c0_94 = arith.constant 0 : index
      %c0_95 = arith.constant 0 : index
      %208 = vector.load %arg19[%c0_94, %c0_95] : memref<16x128xf32, #tpu.memory_space<vmem>>, vector<16x128xf32>
      tpu.vector_store %arg19[%c0_94, %c0_95], %207 {strides = array<i32>} : memref<16x128xf32, #tpu.memory_space<vmem>>, vector<16x128xf32>,
    } else {
    }
    return
  }
  func.func @transform_0(%arg0: i32, %arg1: i32) -> (i32, i32) {
    %c0_i32 = arith.constant 0 : i32
    %c0_i32_0 = arith.constant 0 : i32
    return %arg0, %c0_i32 : i32, i32
  }
  func.func @transform_1(%arg0: i32, %arg1: i32) -> (i32, i32) {
    %c0_i32 = arith.constant 0 : i32
    %c0_i32_0 = arith.constant 0 : i32
    %c0_i32_1 = arith.constant 0 : i32
    return %c0_i32, %c0_i32_0 : i32, i32
  }
  func.func @transform_2(%arg0: i32, %arg1: i32) -> (i32, i32) {
    %c0_i32 = arith.constant 0 : i32
    %c0_i32_0 = arith.constant 0 : i32
    %c0_i32_1 = arith.constant 0 : i32
    return %c0_i32, %c0_i32_0 : i32, i32
  }
  func.func @transform_3(%arg0: i32, %arg1: i32) -> (i32, i32, i32) {
    %c0_i32 = arith.constant 0 : i32
    %c0_i32_0 = arith.constant 0 : i32
    %c0_i32_1 = arith.constant 0 : i32
    return %arg1, %c0_i32, %c0_i32_0 : i32, i32, i32
  }
  func.func @transform_4(%arg0: i32, %arg1: i32) -> (i32, i32, i32) {
    %c0_i32 = arith.constant 0 : i32
    %c0_i32_0 = arith.constant 0 : i32
    %c0_i32_1 = arith.constant 0 : i32
    return %arg1, %c0_i32, %c0_i32_0 : i32, i32, i32
  }
  func.func @transform_5(%arg0: i32, %arg1: i32) -> (i32, i32, i32, i32) {
    %c0_i32 = arith.constant 0 : i32
    %c0_i32_0 = arith.constant 0 : i32
    %c0_i32_1 = arith.constant 0 : i32
    %c0_i32_2 = arith.constant 0 : i32
    return %arg1, %c0_i32, %c0_i32_0, %c0_i32_1 : i32, i32, i32, i32
  }
  func.func @transform_6(%arg0: i32, %arg1: i32) -> (i32, i32, i32) {
    %c0_i32 = arith.constant 0 : i32
    %c0_i32_0 = arith.constant 0 : i32
    %c0_i32_1 = arith.constant 0 : i32
    return %arg1, %c0_i32, %c0_i32_0 : i32, i32, i32
  }
  func.func @transform_7(%arg0: i32, %arg1: i32) -> (i32, i32, i32) {
    %c0_i32 = arith.constant 0 : i32
    %c0_i32_0 = arith.constant 0 : i32
    %c0_i32_1 = arith.constant 0 : i32
    return %arg1, %c0_i32, %c0_i32_0 : i32, i32, i32
  }
  func.func @transform_8(%arg0: i32, %arg1: i32) -> (i32, i32, i32) {
    %c0_i32 = arith.constant 0 : i32
    %c0_i32_0 = arith.constant 0 : i32
    %c0_i32_1 = arith.constant 0 : i32
    return %arg1, %c0_i32, %c0_i32_0 : i32, i32, i32
  }
  func.func @transform_9(%arg0: i32, %arg1: i32) -> (i32, i32, i32) {
    %c0_i32 = arith.constant 0 : i32
    %c0_i32_0 = arith.constant 0 : i32
    %c0_i32_1 = arith.constant 0 : i32
    return %arg1, %c0_i32, %c0_i32_0 : i32, i32, i32
  }
  func.func @transform_10(%arg0: i32, %arg1: i32) -> (i32, i32, i32) {
    %c0_i32 = arith.constant 0 : i32
    %c0_i32_0 = arith.constant 0 : i32
    %c0_i32_1 = arith.constant 0 : i32
    return %arg1, %c0_i32, %c0_i32_0 : i32, i32, i32
  }
  func.func @transform_11(%arg0: i32, %arg1: i32) -> (i32, i32, i32) {
    %c0_i32 = arith.constant 0 : i32
    %c0_i32_0 = arith.constant 0 : i32
    %c0_i32_1 = arith.constant 0 : i32
    return %arg1, %c0_i32, %c0_i32_0 : i32, i32, i32
  }
  func.func @transform_12(%arg0: i32, %arg1: i32) -> (i32, i32, i32) {
    %c0_i32 = arith.constant 0 : i32
    %c0_i32_0 = arith.constant 0 : i32
    %c0_i32_1 = arith.constant 0 : i32
    return %arg1, %c0_i32, %c0_i32_0 : i32, i32, i32
  }
  func.func @transform_13(%arg0: i32, %arg1: i32) -> (i32, i32, i32) {
    %c0_i32 = arith.constant 0 : i32
    %c0_i32_0 = arith.constant 0 : i32
    %c0_i32_1 = arith.constant 0 : i32
    return %arg1, %c0_i32, %c0_i32_0 : i32, i32, i32
  }
  func.func @transform_14(%arg0: i32, %arg1: i32) -> (i32, i32, i32) {
    %c0_i32 = arith.constant 0 : i32
    %c0_i32_0 = arith.constant 0 : i32
    %c0_i32_1 = arith.constant 0 : i32
    return %arg1, %c0_i32, %c0_i32_0 : i32, i32, i32
  }
  func.func @transform_15(%arg0: i32, %arg1: i32) -> (i32, i32) {
    %c0_i32 = arith.constant 0 : i32
    %c0_i32_0 = arith.constant 0 : i32
    %c0_i32_1 = arith.constant 0 : i32
    return %c0_i32, %c0_i32_0 : i32, i32
  }
  func.func @transform_16(%arg0: i32, %arg1: i32) -> (i32, i32) {
    %c0_i32 = arith.constant 0 : i32
    %c0_i32_0 = arith.constant 0 : i32
    %c0_i32_1 = arith.constant 0 : i32
    return %c0_i32, %c0_i32_0 : i32, i32
  }
  func.func @transform_17(%arg0: i32, %arg1: i32) -> (i32, i32) {
    %c0_i32 = arith.constant 0 : i32
    %c0_i32_0 = arith.constant 0 : i32
    return %arg0, %c0_i32 : i32, i32
  }
}

</mosaic_0001>

<bundles_post_ra>
// kernel: _predict_impl.1
= control target key start
LH: loop header
LB: loop body
LE: loop exit
PB: predicated region body
PF: predicated region fallthrough
CT: control target
= control target key end

     0   :  { %s3601_s0 = inlined_call_operand.vmem [shape: f32[32,128], index: 0, kind: input, shape index: {}]   ;;  %s3602_s1 = inlined_call_operand.vmem [shape: f32[1,128], index: 1, kind: input, shape index: {}]   ;;  %s3603_s2 = inlined_call_operand.vmem [shape: f32[1,128], index: 2, kind: input, shape index: {}]   ;;  %s3604_s3 = inlined_call_operand.hbm [shape: bf16[2,128,384], index: 3, kind: input, shape index: {}]   ;;  %s3605_s4 = inlined_call_operand.vmem [shape: f32[2,1,384], index: 4, kind: input, shape index: {}]   ;;  %s3606_s5 = inlined_call_operand.vmem [shape: bf16[2,4,32,128], index: 5, kind: input, shape index: {}]   ;;  %s3607_s6 = inlined_call_operand.vmem [shape: f32[2,1,128], index: 6, kind: input, shape index: {}]   ;;  %s3608_s7 = inlined_call_operand.vmem [shape: f32[2,1,128], index: 7, kind: input, shape index: {}]   ;;  %s3609_s8 = inlined_call_operand.vmem [shape: f32[2,1,128], index: 8, kind: input, shape index: {}]   ;;  %s3610_s9 = inlined_call_operand.vmem [shape: bf16[2,128,256], index: 9, kind: input, shape index: {}]   ;;  %s3611_s10 = inlined_call_operand.vmem [shape: f32[2,1,256], index: 10, kind: input, shape index: {}]   ;;  %s3612_s11 = inlined_call_operand.hbm [shape: bf16[2,256,128], index: 11, kind: input, shape index: {}]   ;;  %s3613_s12 = inlined_call_operand.vmem [shape: f32[2,1,128], index: 12, kind: input, shape index: {}]   ;;  %s3614_s13 = inlined_call_operand.vmem [shape: f32[2,1,128], index: 13, kind: input, shape index: {}]   ;;  %s3615_s14 = inlined_call_operand.vmem [shape: f32[2,1,128], index: 14, kind: input, shape index: {}]   ;;  %s3616_s15 = inlined_call_operand.vmem [shape: bf16[128,128], index: 15, kind: input, shape index: {}]   ;;  %s3617_s16 = inlined_call_operand.hbm [shape: f32[1,128], index: 16, kind: input, shape index: {}]   ;;  %s3618_s17 = inlined_call_operand.vmem [shape: f32[32,128], index: 17, kind: output, shape index: {}]  }
   0x1   :  { %3626 = sst [smem:[#allocation18_spill]] %s3601_s0 }
   0x2   :  { %3627 = sst [smem:[#allocation19_spill]] %s3602_s1 }
   0x3   :  { %3628 = sst [smem:[#allocation20_spill]] %s3603_s2 }
   0x4   :  { %3629 = sst [smem:[#allocation21_spill]] %s3604_s3 }
   0x5   :  { %3630 = sst [smem:[#allocation22_spill]] %s3605_s4 }
   0x6   :  { %3631 = sst [smem:[#allocation23_spill]] %s3606_s5 }
   0x7   :  { %3632 = sst [smem:[#allocation24_spill]] %s3607_s6 }
   0x8   :  { %3633 = sst [smem:[#allocation25_spill]] %s3608_s7 }
   0x9   :  { %3634 = sst [smem:[#allocation26_spill]] %s3609_s8 }
   0xa   :  { %3635 = sst [smem:[#allocation27_spill]] %s3610_s9 }
   0xb   :  { %3636 = sst [smem:[#allocation28_spill]] %s3611_s10 }
   0xc   :  { %3637 = sst [smem:[#allocation29_spill]] %s3612_s11 }
   0xd   :  { %3638 = sst [smem:[#allocation30_spill]] %s3613_s12 }
   0xe   :  { %3639 = sst [smem:[#allocation31_spill]] %s3614_s13 }
   0xf   :  { %3640 = sst [smem:[#allocation32_spill]] %s3615_s14 }
  0x10   :  { %3641 = sst [smem:[#allocation33_spill]] %s3616_s15 }
  0x11   :  { %3642 = sst [smem:[#allocation34_spill]] %s3617_s16 }
  0x12   :  { %3643 = sst [smem:[#allocation35_spill]] %s3618_s17 }
  0x13   :  { %22 = vsyncpa [#allocation4], 0 }
  0x14   :  { %24 = vsyncpa [#allocation4 + $0x1], 0 }
  0x15   :  { %25 = vsyncpa [#allocation6], 0 }
  0x16   :  { %27 = vsyncpa [#allocation6 + $0x1], 0  ;;  %s3124_s24 = smov 0   ;;  %s3126_s25 = smov 0  }
  0x17   :  { %s3128_s26 = smov 0   ;;  %s3130_s27 = smov 0  }
  0x18   :  { %s3132_s28 = smov 0   ;;  %s3134_s29 = smov 0  }
  0x19   :  { %s3136_s0 = smov 0   ;;  %s3138_s30 = smov 0  }
  0x1a LB: > { %3644 = sst [smem:[#allocation11_spill]] %s2998_s25  ;;  %s3619_s18 = sadd.s32 4294967295, %s3022_s30   ;;  %s3022_s30 = sphi %s3138_s30, %s33_s30   ;;  %s3018_s0 = sphi %s3136_s0, %s3691_s0   ;;  %s3014_s29 = sphi %s3134_s29, %s3690_s29   ;;  %s3010_s28 = sphi %s3132_s28, %s3689_s28   ;;  %s3006_s27 = sphi %s3130_s27, %s3688_s27   ;;  %s3002_s26 = sphi %s3128_s26, %s3687_s26   ;;  %s2998_s25 = sphi %s3126_s25, %s3686_s25   ;;  %s2994_s24 = sphi %s3124_s24, %s3685_s24  }
  0x1b   : > { %3645 = sst [smem:[#allocation12_spill]] %s3002_s26  ;;  %p127_p0 = scmp.ne.s32.totalorder %s3002_s26, %s2998_s25 }
  0x1c   : > { %3646 = sst [smem:[#allocation13_spill]] %s3014_s29  ;;  %p128_p1 = scmp.eq.s32.totalorder %s3022_s30, 0 }
  0x1d   : > { %3647 = sst [smem:[#allocation14_spill]] %s3018_s0  ;;  %p133_p2 = scmp.ne.s32.totalorder %s2998_s25, %s2994_s24 }
  0x1e   : > { %p3170_p3 = scmp.eq.s32.totalorder %s3619_s18, 0  ;;  %p3174_p4 = por %p128_p1, %p127_p0 }
  0x1f   : > { %p2283_p5 = scmp.ge.s32.totalorder %s3022_s30, 1  ;;  %p498_p7 = scmp.lt.s32.totalorder %s3022_s30, 5 }
  0x20   : > { %p3181_p6 = por %p3170_p3, %p133_p2  ;;  %s3651_s16 = sld [smem:[#allocation34_spill]] }
  0x21   : > { %p3189_p8 = pnand %p2283_p5, %p498_p7  ;;  %s3024_s19 = smov [#allocation7]  }
  0x22   : > { %s521_s15 = sshll.u32 %s3024_s19, 4  ;;  %p2717_p10 = scmp.lt.s32.totalorder %s3022_s30, 4  ;;  %s522_s15 = int_to_ptr.vmem [resolvable:$true] %s521_s15 }
  0x23   : > { %p2705_p9 = pneg %p3189_p8  ;;  %s42_s23 = sadd.s32 1, %s3014_s29 }
  0x24   : > { %p3200_p12 = pnand %p2717_p10, %p3174_p4  ;;  %p43_p13 = scmp.ge.s32.totalorder %s42_s23, 2 }
  0x25   : > { %p2706_p11 = pnand %p2705_p9, %p3170_p3  ;;  %s541_s2 = sand.u32 1, %s3002_s26  }
  0x26   : > { %s519_s24 = sshll.u32 %s3651_s16, 4  ;;  %s45_s16 = sadd.s32 1, %s3018_s0  ;;  %s520_s24 = int_to_ptr.hbm [resolvable:$true] %s519_s24 }
  0x27   : > { %2708 = dma.hbm_to_vmem [thread:$0]  (!%p2706_p11), %s520_s24, 16, %s522_s15, [#allocation6]  }
  0x28   : > { %s2693_s17 = smul.u32 192, %s541_s2  ;;  %s3693_s23 = smov (%p43_p13, %s42_s23), 0 }
  0x29   : > { %3654 = sst [smem:[#allocation15_spill]] %s3693_s23  ;;  %s3695_s16 = smov (!%p43_p13, %s45_s16), %s3018_s0 }
  0x2a   : > { %s117_s19 = ssub.s32 %s3014_s29, %s3693_s23  ;;  %p47_p0 = scmp.ge.s32.totalorder %s3695_s16, 2 }
  0x2b   : > { %p118_p1 = scmp.eq.s32.totalorder %s117_s19, 0  ;;  %s2694_s20 = smul.u32 192, %s3014_s29 }
  0x2c   : > { %s545_s14 = scalar_lea.vmem [#allocation3], %s2693_s17  ;;  %s3697_s16 = smov (%p47_p0, %s3695_s16), 0 }
  0x2d   : > { %s553_s13 = sshll.u32 %s545_s14, 4  ;;  %3655 = sst [smem:[#allocation16_spill]] %s3697_s16  ;;  %s554_s13 = int_to_ptr.vmem [resolvable:$true] %s553_s13 }
  0x2e   : > { %s3656_s15 = sadd.s32 1, %s3002_s26  ;;  %s3658_s3 = sld [smem:[#allocation21_spill]] }
  0x2f   : > { %s3218_s24 = scalar_select %p118_p1, %s3002_s26, %s3656_s15  }
  0x30   : > { %s542_s23 = scalar_lea.sflag [#allocation4], %s541_s2  ;;  %s3025_s8 = smov 192  }
  0x31   : > { %3657 = sst [smem:[#allocation17_spill]] %s3218_s24  ;;  %s3026_s19 = smov 12  }
  0x32   : > { %s611_s17 = sand.u32 1, %s3022_s30   ;;  %s2287_s14 = sshll.u32 %s541_s2, 7 }
  0x33   : > { %s2618_s7 = sshll.u32 %s3014_s29, 7  ;;  %s615_s16 = scalar_lea.vmem [#allocation5], %s2287_s14 }
  0x34   : > { %s550_s9 = scalar_lea.hbm %s3658_s3, %s2694_s20  ;;  %s623_s6 = sshll.u32 %s615_s16, 4  ;;  %s624_s6 = int_to_ptr.vmem [resolvable:$true] %s623_s6 }
  0x35   : > { %s551_s0 = sshll.u32 %s550_s9, 4  ;;  %s3659_s11 = sld [smem:[#allocation29_spill]]  ;;  %s552_s0 = int_to_ptr.hbm [resolvable:$true] %s551_s0 }
  0x36   : > { %2712 = dma.hbm_to_vmem [thread:$0]  (!%p3200_p12), %s552_s0, 3072, %s554_s13, %s542_s23, %s3025_s8, %s3025_s8, %s3026_s19  }
  0x37   : > { %s612_s9 = scalar_lea.sflag [#allocation6], %s611_s17  ;;  %s3027_s12 = smov 64  }
  0x38   : > { %s3028_s20 = smov 4   ;;  %s655_s2 = sand.u32 (!%p3189_p8), 1, %s2998_s25  }
  0x39   : > { %653 = sbr.rel (%p3189_p8) target bundleno = 2814 (0xafe), region = 88  ;;  %s656_s13 = scalar_lea.sflag (!%p3189_p8), [#allocation4], %s655_s2 }
  0x3a   : > { %s2695_s8 = smul.u32 (!%p3189_p8), 192, %s655_s2 }
  0x3b   : > { %s620_s26 = scalar_lea.hbm %s3659_s11, %s2618_s7 }
  0x3c   : > { %s621_s10 = sshll.u32 %s620_s26, 4  ;;  %s3235_s16 = scalar_lea.vmem (!%p3189_p8), [#allocation3], %s2695_s8  ;;  %s622_s10 = int_to_ptr.hbm [resolvable:$true] %s621_s10 }
  0x3d   : > { %2715 = dma.hbm_to_vmem [thread:$0]  (!%p3200_p12), %s622_s10, 2048, %s624_s6, %s612_s9, %s3027_s12, %s3027_s12, %s3028_s20  }
  0x3e   : > { %2981 = dma.done.wait (%p3181_p6), %s656_s13, 3072  }
  0x3f   : > { %2983 = vsyncadd (%p3181_p6), %s656_s13, 4294964224  ;;  %s3660_s7 = sadd.s32 4294967295, %s3022_s30   ;;  %s2291_s6 = sshll.u32 %s655_s2, 7 }
  0x40   : > { %s665_s26 = sand.u32 1, %s3660_s7   ;;  %s3243_s18 = scalar_lea.vmem [#allocation5], %s2291_s6 }
  0x41   : > { %s666_s0 = scalar_lea.sflag [#allocation6], %s665_s26 }
  0x42   : > { %2985 = dma.done.wait (%p3181_p6), %s666_s0, 2048  }
  0x43   : > { %2987 = vsyncadd (%p3181_p6), %s666_s0, 4294965248 }
  0x44   : > { %2989 = dma.done.wait (%p3170_p3), [#allocation6], 16  }
  0x45   : > { %2991 = vsyncadd (%p3170_p3), [#allocation6], 4294967280  ;;  %s2293_s22 = sshll.u32 %s3010_s28, 1  ;;  %p778_p2 = scmp.lt.s32.totalorder %s3006_s27, 1 }
  0x46   : > { %p773_p4 = scmp.lt.s32.totalorder %s2293_s22, 3  ;;  %s3661_s5 = sld [smem:[#allocation23_spill]] }
  0x47   : > { %s3256_s23 = scalar_select %p778_p2, %s3006_s27, 1 }
  0x48   : > { %s3699_s22 = smov (!%p773_p4, %s2293_s22), 3  ;;  %s3662_s10 = sld [smem:[#allocation18_spill]] }
  0x49   : > { %s2696_s1 = smul.u32 3, %s3256_s23  ;;  %s2619_s21 = sshll.u32 %s3256_s23, 6 }
  0x4a   : > { %s2294_s24 = sshll.u32 %s3699_s22, 3  ;;  %s3663_s4 = sld [smem:[#allocation22_spill]] }
  0x4b   : > { %s2620_s11 = sshll.u32 %s3256_s23, 7  ;;  %s3669_s6 = sld [smem:[#allocation30_spill]] }
  0x4c   : > { %s3263_s17 = scalar_lea.vmem %s3661_s5, %s2619_s21  ;;  %s3670_s19 = sld [smem:[#allocation31_spill]] }
  0x4d   : > { %s3671_s26 = sld [smem:[#allocation32_spill]]  ;;  %p2302_p3 = scmp.ne.s32.totalorder %s3006_s27, 0 }
  0x4e   : > { %s776_s9 = scalar_lea.vmem %s3662_s10, %s2294_s24  ;;  %s3667_s10 = sld [smem:[#allocation27_spill]] }
  0x4f   : > { %s3673_s5 = sld [smem:[#allocation19_spill]] (!%p2302_p3) }
  0x50   : > { %s3271_s2 = scalar_lea.vmem %s3663_s4, %s2696_s1  ;;  %s2299_s1 = sshll.u32 %s3256_s23, 1 }
  0x51   : > { %s3668_s4 = sld [smem:[#allocation28_spill]]  ;;  %s807_s0 = scalar_lea.vmem %s3669_s6, %s3256_s23 }
  0x52   : > { %s810_s21 = scalar_lea.vmem %s3670_s19, %s3256_s23 }
  0x53   : > { %s813_s14 = scalar_lea.vmem %s3671_s26, %s3256_s23  ;;  %s3674_s26 = sld [smem:[#allocation20_spill]] (!%p2302_p3) }
  0x54   : > { %s3289_s29 = scalar_lea.vmem %s3667_s10, %s2620_s11  ;;  %s3672_s10 = sld [smem:[#allocation35_spill]] }
  0x56   : > { %824 = sbr.rel (%p2302_p3) target bundleno = 367 (0x16f), region = 104 }
  0x57   : > { %s3295_s8 = scalar_lea.vmem %s3668_s4, %s2299_s1 }
  0x5a   : > { %s3312_s25 = scalar_lea.vmem %s3672_s10, %s2294_s24 }
  0x5b   : > { %v825_v0 = vld [vmem:[%s776_s9] sm:$0xff]  ;;  %v826_v1 = vld [vmem:[%s776_s9 + $0x8] sm:$0xff]  ;;  %v3029_v2 = vmov 128.0  }
  0x5c   : > { %829 = vadd.xlane.f32.xlu0 %v825_v0  ;;  %2795 = vrcp.f32 %v3029_v2  ;;  %v2793_v31 = vld [vmem:[%s3673_s5] ss:$0 sm:$0xff] }
  0x5d   : > { %v2794_v34 = vld [vmem:[%s3674_s26] ss:$0 sm:$0xff] }
  0x62   : > { %v2796_v3 = vpop.eup %2795 }
  0x63   : > { %v834_v4 = vmul.f32 128.0, %v2796_v3  ;;  %vm838_vm0 = vweird.f32 %v2796_v3 }
  0x64   : > { %831 = vadd.xlane.f32.xlu0 %v826_v1 }
  0x65   : > { %v835_v5 = vsub.f32 1.0, %v834_v4 }
  0x67   : > { %v836_v6 = vmul.f32 %v2796_v3, %v835_v5 }
  0x69   : > { %v837_v7 = vadd.f32 %v2796_v3, %v836_v6 }
  0x6b   : > { %v839_v8 = vsel %vm838_vm0, %v2796_v3, %v837_v7 }
  0xcf   : > { %v830_v9 = vpop.xlane.xlu0 %829 }
  0xd0   : > { %v840_v10 = vmul.f32 %v839_v8, %v830_v9 }
  0xd2   : > { %v842_v11 = vsub.f32 %v825_v0, %v840_v10 }
  0xd4   : > { %v844_v12 = vmul.f32 %v842_v11, %v842_v11 }
  0xd6   : > { %846 = vadd.xlane.f32.xlu1 %v844_v12 }
  0xd7   : > { %v832_v13 = vpop.xlane.xlu0 %831 }
  0xd8   : > { %v841_v14 = vmul.f32 %v839_v8, %v832_v13 }
  0xda   : > { %v843_v15 = vsub.f32 %v826_v1, %v841_v14 }
  0xdc   : > { %v845_v16 = vmul.f32 %v843_v15, %v843_v15 }
  0xde   : > { %848 = vadd.xlane.f32.xlu1 %v845_v16 }
 0x149   : > { %v847_v17 = vpop.xlane.xlu1 %846 }
 0x14a   : > { %v850_v18 = vmul.f32 %v847_v17, %v839_v8 }
 0x14c   : > { %v852_v19 = vadd.f32 1e-12, %v850_v18 }
 0x14e   : > { %2797 = vrsqrt.f32 %v852_v19  ;;  %vm860_vm2 = vweird.f32 %v852_v19 }
 0x151   : > { %v849_v20 = vpop.xlane.xlu1 %848 }
 0x152   : > { %v851_v21 = vmul.f32 %v849_v20, %v839_v8 }
 0x154   : > { %v2798_v22 = vpop.eup %2797  ;;  %v853_v23 = vadd.f32 1e-12, %v851_v21 }
 0x155   : > { %v855_v24 = vmul.f32 %v2798_v22, %v852_v19  ;;  %vm861_vm1 = vweird.f32 %v2798_v22 }
 0x156   : > { %2799 = vrsqrt.f32 %v853_v23  ;;  %vm862_vm3 = vmor %vm860_vm2, %vm861_vm1  ;;  %vm870_vm5 = vweird.f32 %v853_v23 }
 0x157   : > { %v856_v25 = vmul.f32 %v2798_v22, %v855_v24 }
 0x159   : > { %v857_v26 = vmul.f32 0.5, %v856_v25 }
 0x15b   : > { %v858_v27 = vsub.f32 1.5, %v857_v26 }
 0x15c   : > { %v2800_v28 = vpop.eup %2799 }
 0x15d   : > { %v859_v29 = vmul.f32 %v2798_v22, %v858_v27  ;;  %v865_v30 = vmul.f32 %v2800_v28, %v853_v23  ;;  %vm871_vm4 = vweird.f32 %v2800_v28 }
 0x15e   : > { %vm872_vm6 = vmor %vm870_vm5, %vm871_vm4 }
 0x15f   : > { %v863_v32 = vsel %vm862_vm3, %v2798_v22, %v859_v29  ;;  %v866_v33 = vmul.f32 %v2800_v28, %v865_v30 }
 0x160   : > { %v874_v35 = vmul.f32 %v863_v32, %v842_v11 }
 0x161   : > { %v867_v36 = vmul.f32 0.5, %v866_v33 }
 0x162   : > { %v879_v37 = vmul.f32 %v2793_v31, %v874_v35 }
 0x163   : > { %v868_v38 = vsub.f32 1.5, %v867_v36 }
 0x164   : > { %v884_v39 = vadd.f32 %v2794_v34, %v879_v37 }
 0x165   : > { %v869_v40 = vmul.f32 %v2800_v28, %v868_v38 }
 0x166   : > { %886 = vst [vmem:[#allocation2] sm:$0xff] %v884_v39 }
 0x167   : > { %v873_v41 = vsel %vm872_vm6, %v2800_v28, %v869_v40 }
 0x168   : > { %v875_v42 = vmul.f32 %v873_v41, %v843_v15 }
 0x16a   : > { %v880_v43 = vmul.f32 %v2793_v31, %v875_v42 }
 0x16c   : > { %v885_v44 = vadd.f32 %v2794_v34, %v880_v43 }
 0x16e   : > { %887 = vst [vmem:[#allocation2 + $0x8] sm:$0xff] %v885_v44 }
 0x16f PF: > { %v2389_v45 = vld [vmem:[%s3235_s16 + $0xa8] sm:$0xf]  ;;  %v2643_v46 = vld [vmem:[%s3235_s16 + $0xb0] sm:$0xf0]  ;;  %v2642_v47 = vld [vmem:[%s3235_s16 + $0xac] sm:$0xf] }
 0x170   : > { %v2390_v48 = vor.u32 %v2643_v46, %v2389_v45  ;;  %v2391_v49 = vld [vmem:[%s3235_s16 + $0xb4] sm:$0xf0]  ;;  %v2377_v50 = vld [vmem:[%s3235_s16 + $0x90] sm:$0xf]  ;;  %v2640_v51 = vld [vmem:[%s3235_s16 + $0x98] sm:$0xf0] }
 0x171   : > { %v2394_v52 = vor.u32 %v2642_v47, %v2391_v49  ;;  %v2639_v53 = vld [vmem:[%s3235_s16 + $0x94] sm:$0xf]  ;;  %v2379_v54 = vld [vmem:[%s3235_s16 + $0x9c] sm:$0xf0]  ;;  %v2378_v55 = vor.u32 %v2640_v51, %v2377_v50  ;;  %v2365_v57 = vld [vmem:[%s3235_s16 + $0x78] sm:$0xf] }
 0x172   : > { %1059 = vmatpush.bf16.msra.mxu0 %v2390_v48  ;;  %v2382_v56 = vor.u32 %v2639_v53, %v2379_v54  ;;  %v2637_v58 = vld [vmem:[%s3235_s16 + $0x80] sm:$0xf0]  ;;  %v2636_v59 = vld [vmem:[%s3235_s16 + $0x7c] sm:$0xf]  ;;  %v2367_v60 = vld [vmem:[%s3235_s16 + $0x84] sm:$0xf0] }
 0x173   : > { %1073 = vmatpush.bf16.msra.mxu1 %v2394_v52  ;;  %v2366_v61 = vor.u32 %v2637_v58, %v2365_v57  ;;  %v2370_v62 = vor.u32 %v2636_v59, %v2367_v60  ;;  %v2353_v63 = vld [vmem:[%s3235_s16 + $0x60] sm:$0xf]  ;;  %v2634_v0 = vld [vmem:[%s3235_s16 + $0x68] sm:$0xf0]  ;;  %v2633_v1 = vld [vmem:[%s3235_s16 + $0x64] sm:$0xf] }
 0x174   : > { %v2355_v2 = vld [vmem:[%s3235_s16 + $0x6c] sm:$0xf0]  ;;  %v2354_v3 = vor.u32 %v2634_v0, %v2353_v63  ;;  %v2341_v4 = vld [vmem:[%s3235_s16 + $0x48] sm:$0xf]  ;;  %v2644_v6 = vld [vmem:[%s3235_s16 + $0xb8] sm:$0xf0] }
 0x175   : > { %v2397_v5 = vld [vmem:[%s3235_s16 + $0xb0] sm:$0xf]  ;;  %v2358_v7 = vor.u32 %v2633_v1, %v2355_v2  ;;  %v2631_v8 = vld [vmem:[%s3235_s16 + $0x50] sm:$0xf0]  ;;  %v2385_v10 = vld [vmem:[%s3235_s16 + $0x98] sm:$0xf] }
 0x176   : > { %1060 = vmatpush.bf16.msra.mxu0 %v2378_v55  ;;  %v2398_v9 = vor.u32 %v2644_v6, %v2397_v5  ;;  %v2641_v11 = vld [vmem:[%s3235_s16 + $0xa0] sm:$0xf0]  ;;  %v2630_v12 = vld [vmem:[%s3235_s16 + $0x4c] sm:$0xf]  ;;  %v2343_v13 = vld [vmem:[%s3235_s16 + $0x54] sm:$0xf0]  ;;  %v2342_v15 = vor.u32 %v2631_v8, %v2341_v4 }
 0x177   : > { %1074 = vmatpush.bf16.msra.mxu1 %v2382_v56  ;;  %v2386_v14 = vor.u32 %v2641_v11, %v2385_v10  ;;  %v2373_v16 = vld [vmem:[%s3235_s16 + $0x80] sm:$0xf]  ;;  %v2638_v17 = vld [vmem:[%s3235_s16 + $0x88] sm:$0xf0]  ;;  %v2346_v18 = vor.u32 %v2630_v12, %v2343_v13  ;;  %v2329_v19 = vld [vmem:[%s3235_s16 + $0x30] sm:$0xf] }
 0x178   : > { %1087 = vmatpush.bf16.msra.mxu2 %v2398_v9  ;;  %v2628_v20 = vld [vmem:[%s3235_s16 + $0x38] sm:$0xf0]  ;;  %v2627_v21 = vld [vmem:[%s3235_s16 + $0x34] sm:$0xf]  ;;  %v2331_v22 = vld [vmem:[%s3235_s16 + $0x3c] sm:$0xf0]  ;;  %v2374_v23 = vor.u32 %v2638_v17, %v2373_v16 }
 0x179   : > { %v2330_v24 = vor.u32 %v2628_v20, %v2329_v19  ;;  %v2361_v25 = vld [vmem:[%s3235_s16 + $0x68] sm:$0xf]  ;;  %v2635_v26 = vld [vmem:[%s3235_s16 + $0x70] sm:$0xf0]  ;;  %v2334_v27 = vor.u32 %v2627_v21, %v2331_v22  ;;  %v2317_v28 = vld [vmem:[%s3235_s16 + $0x18] sm:$0xf] }
 0x17a   : > { %1061 = vmatpush.bf16.msra.mxu0 %v2366_v61  ;;  %v2625_v29 = vld [vmem:[%s3235_s16 + $0x20] sm:$0xf0]  ;;  %v2624_v30 = vld [vmem:[%s3235_s16 + $0x1c] sm:$0xf]  ;;  %v2319_v31 = vld [vmem:[%s3235_s16 + $0x24] sm:$0xf0]  ;;  %v2362_v32 = vor.u32 %v2635_v26, %v2361_v25 }
 0x17b   : > { %1075 = vmatpush.bf16.msra.mxu1 %v2370_v62  ;;  %v2318_v33 = vor.u32 %v2625_v29, %v2317_v28  ;;  %v2349_v34 = vld [vmem:[%s3235_s16 + $0x50] sm:$0xf]  ;;  %v2632_v35 = vld [vmem:[%s3235_s16 + $0x58] sm:$0xf0]  ;;  %v2322_v36 = vor.u32 %v2624_v30, %v2319_v31  ;;  %v2305_v37 = vld [vmem:[%s3235_s16] sm:$0xf] }
 0x17c   : > { %1088 = vmatpush.bf16.msra.mxu2 %v2386_v14  ;;  %v2622_v38 = vld [vmem:[%s3235_s16 + $0x8] sm:$0xf0]  ;;  %v2621_v39 = vld [vmem:[%s3235_s16 + $0x4] sm:$0xf]  ;;  %v2307_v40 = vld [vmem:[%s3235_s16 + $0xc] sm:$0xf0]  ;;  %v2350_v42 = vor.u32 %v2632_v35, %v2349_v34 }
 0x17d   : > { %v3363_v41 = vld [vmem:[#allocation2] sm:$0xff]  ;;  %v2306_v43 = vor.u32 %v2622_v38, %v2305_v37  ;;  %v3365_v44 = vld [vmem:[#allocation2 + $0x8] sm:$0xff]  ;;  %v2629_v46 = vld [vmem:[%s3235_s16 + $0x40] sm:$0xf0]  ;;  %v2310_v47 = vor.u32 %v2621_v39, %v2307_v40  ;;  %vm1104_vm7 = vcmask 261120   ;;  %s3030_s1 = smov 96  }
 0x17e   : > { %1062 = vmatpush.bf16.msra.mxu0 %v2354_v3  ;;  %v2337_v45 = vld [vmem:[%s3235_s16 + $0x38] sm:$0xf]  ;;  %v890_v48 = vpack.c.bf16 %v3365_v44, %v3363_v41  ;;  %v2325_v50 = vld [vmem:[%s3235_s16 + $0x20] sm:$0xf]  ;;  %v2626_v51 = vld [vmem:[%s3235_s16 + $0x28] sm:$0xf0] }
 0x17f   : > { %1076 = vmatpush.bf16.msra.mxu1 %v2358_v7  ;;  %v2338_v49 = vor.u32 %v2629_v46, %v2337_v45  ;;  %v2326_v52 = vor.u32 %v2626_v51, %v2325_v50  ;;  %v2313_v53 = vld [vmem:[%s3235_s16 + $0x8] sm:$0xf]  ;;  %v2623_v54 = vld [vmem:[%s3235_s16 + $0x10] sm:$0xf0]  ;;  %v923_v57 = vld [vmem:[%s3271_s2] sm:$0x7] }
 0x180   : > { %1089 = vmatpush.bf16.msra.mxu2 %v2374_v23  ;;  %v2314_v55 = vor.u32 %v2623_v54, %v2313_v53  ;;  %v926_v59 = vperm.slane %v923_v57, 1  ;;  %v925_v63 = vperm.slane %v923_v57, 0  ;;  %v927_v7 = vperm.slane %v923_v57, 2  ;;  %s3031_s16 = smov 32   ;;  %s3032_s2 = smov 64   ;;  %v2645_v19 = vld [vmem:[%s3263_s17] sm:$0xff] }
 0x181   : > { %vm1125_vm8 = vcmask 130048   ;;  %s3675_s20 = sld [smem:[#allocation24_spill]]  ;;  %p2583_p5 = scmp.ne.s32.totalorder %s3006_s27, 1 }
 0x182   : > { %1063 = vmatpush.bf16.msra.mxu0 %v2342_v15  ;;  %s3677_s6 = sld [smem:[#allocation25_spill]] }
 0x183   : > { %1077 = vmatpush.bf16.msra.mxu1 %v2346_v18  ;;  %v2646_v18 = vld [vmem:[%s3263_s17 + $0x8] sm:$0xff]  ;;  %s3679_s11 = sld [smem:[#allocation26_spill]] }
 0x184   : > { %1090 = vmatpush.bf16.msra.mxu2 %v2362_v32 }
 0x186   : > { %1064 = vmatpush.bf16.msra.mxu0 %v2330_v24 }
 0x187   : > { %1078 = vmatpush.bf16.msra.mxu1 %v2334_v27  ;;  %s3676_s13 = scalar_lea.vmem %s3675_s20, %s3256_s23 }
 0x188   : > { %1091 = vmatpush.bf16.msra.mxu2 %v2350_v42  ;;  %s3678_s22 = scalar_lea.vmem %s3677_s6, %s3256_s23 }
 0x189   : > { %s3680_s15 = scalar_lea.vmem %s3679_s11, %s3256_s23 }
 0x18a   : > { %1065 = vmatpush.bf16.msra.mxu0 %v2318_v33 }
 0x18b   : > { %1079 = vmatpush.bf16.msra.mxu1 %v2322_v36 }
 0x18c   : > { %1092 = vmatpush.bf16.msra.mxu2 %v2338_v49 }
 0x18e   : > { %1066 = vmatpush.bf16.msra.mxu0 %v2306_v43 }
 0x18f   : > { %1080 = vmatpush.bf16.msra.mxu1 %v2310_v47 }
 0x190   : > { %1093 = vmatpush.bf16.msra.mxu2 %v2326_v52 }
 0x191   : > { %1067 = vmatmul.bf16.vlgmr.msra.gmra.mxu0 %v890_v48 }
 0x192   : > { %1081 = vmatmul.bf16.vlgmr.msra.gmra.mxu1 %v890_v48 }
 0x194   : > { %1094 = vmatpush.bf16.msra.mxu2 %v2314_v55 }
 0x197   : > { %1095 = vmatmul.bf16.vlgmr.msra.gmra.mxu2 %v890_v48 }
 0x198   : > { %1297 = vmatpush.bf16.msrb.mxu2 %v2646_v18 }
 0x19c   : > { %1298 = vmatpush.bf16.msrb.mxu2 %v2645_v19 }
 0x20e   : > { %v1068_v58 = vpop.f32.mrf.mxu0 }
 0x20f   : > { %v1082_v56 = vpop.f32.mrf.mxu1  ;;  %v1069_v3 = vadd.f32 %v1068_v58, %v925_v63 }
 0x210   : > { %v1083_v61 = vadd.f32 %v1082_v56, %v926_v59 }
 0x216   : > { %v1070_v1 = vpop.f32.mrf.mxu0 }
 0x217   : > { %v1084_v60 = vpop.f32.mrf.mxu1  ;;  %v1071_v4 = vadd.f32 %v1070_v1, %v925_v63 }
 0x218   : > { %v1085_v62 = vadd.f32 %v1084_v60, %v926_v59 }
 0x219   : > { %v1101_v6 = vpack.c.bf16 %v1071_v4, %v1069_v3 }
 0x21a   : > { %v1102_v0 = vpack.c.bf16 %v1085_v62, %v1083_v61  ;;  %v1096_v5 = vpop.f32.mrf.mxu2 }
 0x21b   : > { %v1097_v8 = vadd.f32 %v1096_v5, %v927_v7 }
 0x21c   : > { %1175 = vrot.lane.b32.xlu2 %v1102_v0, %s3030_s1  ;;  %v1109_v2 = vsel %vm1104_vm7, %v1102_v0, 0 }
 0x21d   : > { %1118 = vmatpush.bf16.xpose.msra.mxu3 %v1109_v2 }
 0x222   : > { %v1098_v9 = vpop.f32.mrf.mxu2 }
 0x223   : > { %v1099_v10 = vadd.f32 %v1098_v9, %v927_v7 }
 0x224   : > { %1172 = vrot.lane.b32.xlu2 %v1101_v6, %s3030_s1  ;;  %2399 = vmatmul.msk.bf16.vlgmr.msra.gmra.mxu3 %vm1104_vm7, %v1101_v6 }
 0x225   : > { %v3380_v11 = vpack.c.bf16 %v1099_v10, %v1097_v8 }
 0x227   : > { %1159 = vmatpush.bf16.msrb.mxu3 %v3380_v11 }
 0x22c   : > { %1409 = vrot.lane.b32.xlu2 %v1101_v6, %s3031_s16 }
 0x234   : > { %1305 = vrot.lane.b32.xlu2 %v1101_v6, %s3032_s2 }
 0x276   : > { %v1176_v12 = vpop.permute.xlu2 %1175 }
 0x277   : > { %v1181_v13 = vsel %vm1104_vm7, %v1176_v12, 0 }
 0x278   : > { %1190 = vmatpush.bf16.xpose.msra.mxu3 %v1181_v13 }
 0x27e   : > { %v1173_v39 = vpop.permute.xlu2 %1172 }
 0x286   : > { %v1410_v43 = vpop.permute.xlu2 %1409 }
 0x28e   : > { %v1306_v45 = vpop.permute.xlu2 %1305 }
 0x2a7   : > { %v1120_v14 = vpop.f32.mrf.mxu3 }
 0x2a8   : > { %v1126_v15 = vsel %vm1125_vm8, %v1120_v14, -inf }
 0x2a9   : > { %1127 = vmax.xlane.f32.xlu0 %v1126_v15 }
 0x2af   : > { %v1122_v16 = vpop.f32.mrf.mxu3 }
 0x2b0   : > { %v1129_v17 = vsel %vm1125_vm8, %v1122_v16, -inf }
 0x2b1   : > { %1130 = vmax.xlane.f32.xlu0 %v1129_v17 }
 0x2c5   : > { %1411 = vrot.lane.b32.xlu0 %v1102_v0, %s3031_s16 }
 0x31c   : > { %v1128_v20 = vpop.xlane.xlu0 %1127 }
 0x31d   : > { %v1132_v21 = vsub.f32 %v1120_v14, %v1128_v20 }
 0x31f   : > { %v1134_v22 = vmul.f32 1.442695, %v1132_v21 }
 0x321   : > { %2807 = vpow2.f32 %v1134_v22 }
 0x324   : > { %v1131_v23 = vpop.xlane.xlu0 %1130 }
 0x325   : > { %v1133_v24 = vsub.f32 %v1122_v16, %v1131_v23 }
 0x327   : > { %v2808_v25 = vpop.eup %2807  ;;  %v1136_v26 = vmul.f32 1.442695, %v1133_v24 }
 0x328   : > { %v1138_v27 = vsel %vm1125_vm8, %v2808_v25, 0.0 }
 0x329   : > { %2809 = vpow2.f32 %v1136_v26  ;;  %1139 = vadd.xlane.f32.xlu1 %v1138_v27 }
 0x32f   : > { %v2810_v28 = vpop.eup %2809 }
 0x330   : > { %v1141_v29 = vsel %vm1125_vm8, %v2810_v28, 0.0 }
 0x331   : > { %1142 = vadd.xlane.f32.xlu1 %v1141_v29 }
 0x337   : > { %v1412_v30 = vpop.permute.xlu0 %1411 }
 0x338   : > { %v1417_v31 = vsel %vm1104_vm7, %v1412_v30, 0 }
 0x339   : > { %1426 = vmatpush.bf16.xpose.msra.mxu2 %v1417_v31 }
 0x34a   : > { %1307 = vrot.lane.b32.xlu1 %v1102_v0, %s3032_s2 }
 0x39c   : > { %v1140_v32 = vpop.xlane.xlu1 %1139 }
 0x39d   : > { %2811 = vrcp.f32 %v1140_v32 }
 0x3a3   : > { %v2812_v34 = vpop.eup %2811 }
 0x3a4   : > { %v1143_v33 = vpop.xlane.xlu1 %1142  ;;  %v1146_v36 = vmul.f32 %v2812_v34, %v2808_v25 }
 0x3a5   : > { %2813 = vrcp.f32 %v1143_v33 }
 0x3ab   : > { %v2814_v35 = vpop.eup %2813 }
 0x3ac   : > { %v1147_v37 = vmul.f32 %v2814_v35, %v2810_v28 }
 0x3ae   : > { %v1148_v38 = vpack.c.bf16 %v1147_v37, %v1146_v36 }
 0x3b0   : > { %2400 = vmatmul.msk.bf16.vlgmr.msrb.gmra.mxu3 %vm1125_vm8, %v1148_v38  ;;  %v2648_v38 = vld [vmem:[%s3263_s17 + $0x18] sm:$0xff] }
 0x3b1   : > { %1268 = vmatpush.bf16.msrb.mxu1 %v2648_v38  ;;  %v2668_v38 = vld [vmem:[%s3289_s29 + $0x74] sm:$0xf0] }
 0x3bc   : > { %v1308_v40 = vpop.permute.xlu1 %1307 }
 0x3bd   : > { %v1313_v42 = vsel %vm1104_vm7, %v1308_v40, 0 }
 0x3be   : > { %1322 = vmatpush.bf16.xpose.msrb.mxu3 %v1313_v42 }
 0x3c0   : > { %2401 = vmatmul.msk.bf16.vlgmr.msra.gmra.mxu3 %vm1104_vm7, %v1173_v39  ;;  %v2647_v39 = vld [vmem:[%s3263_s17 + $0x10] sm:$0xff] }
 0x3c1   : > { %1269 = vmatpush.bf16.msrb.mxu1 %v2647_v39  ;;  %v2667_v39 = vld [vmem:[%s3289_s29 + $0x74] sm:$0xf] }
 0x3d0   : > { %2425 = vmatmul.msk.bf16.vlgmr.msrb.gmra.mxu3 %vm1104_vm7, %v1306_v45 }
 0x433   : > { %v1161_v46 = vpop.f32.mrf.mxu3 }
 0x43b   : > { %v1163_v47 = vpop.f32.mrf.mxu3 }
 0x43c   : > { %v1166_v48 = vpack.c.bf16 %v1163_v47, %v1161_v46 }
 0x43e   : > { %2424 = vmatmul.msk.bf16.vlgmr.msrb.gmra.mxu2 %vm1104_vm7, %v1166_v48 }
 0x443   : > { %v1192_v49 = vpop.f32.mrf.mxu3 }
 0x444   : > { %v1197_v50 = vsel %vm1125_vm8, %v1192_v49, -inf }
 0x445   : > { %1198 = vmax.xlane.f32.xlu2 %v1197_v50 }
 0x44b   : > { %v1194_v51 = vpop.f32.mrf.mxu3 }
 0x44c   : > { %v1200_v52 = vsel %vm1125_vm8, %v1194_v51, -inf }
 0x44d   : > { %1201 = vmax.xlane.f32.xlu0 %v1200_v52 }
 0x44e   : > { %2440 = vmatmul.msk.bf16.vlgmr.msra.gmra.mxu2 %vm1104_vm7, %v1410_v43 }
 0x453   : > { %v1324_v53 = vpop.f32.mrf.mxu3 }
 0x454   : > { %v1329_v54 = vsel %vm1125_vm8, %v1324_v53, -inf }
 0x455   : > { %1330 = vmax.xlane.f32.xlu0 %v1329_v54 }
 0x45b   : > { %v1326_v12 = vpop.f32.mrf.mxu3 }
 0x45c   : > { %v1332_v13 = vsel %vm1125_vm8, %v1326_v12, -inf }
 0x4b8   : > { %v1199_v59 = vpop.xlane.xlu2 %1198 }
 0x4b9   : > { %v1203_v60 = vsub.f32 %v1192_v49, %v1199_v59 }
 0x4bb   : > { %v1205_v0 = vmul.f32 1.442695, %v1203_v60 }
 0x4c0   : > { %v1202_v55 = vpop.xlane.xlu0 %1201 }
 0x4c1   : > { %v1204_v56 = vsub.f32 %v1194_v51, %v1202_v55  ;;  %v3404_v57 = vpop.f32.mrf.mxu2 }
 0x4c3   : > { %v1207_v58 = vmul.f32 1.442695, %v1204_v56 }
 0x4c5   : > { %2815 = vpow2.f32 %v1207_v58 }
 0x4c6   : > { %2817 = vpow2.f32 %v1205_v0  ;;  %v2650_v0 = vld [vmem:[%s3263_s17 + $0x28] sm:$0xff] }
 0x4c7   : > { %1399 = vmatpush.bf16.msra.mxu1 %v2650_v0  ;;  %v2481_v0 = vld [vmem:[%s3289_s29 + $0x30] sm:$0xf] }
 0x4c8   : > { %v1331_v1 = vpop.xlane.xlu0 %1330 }
 0x4c9   : > { %v3406_v61 = vpop.f32.mrf.mxu2  ;;  %v1335_v2 = vsub.f32 %v1324_v53, %v1331_v1  ;;  %v2649_v1 = vld [vmem:[%s3263_s17 + $0x20] sm:$0xff] }
 0x4cb   : > { %v2816_v62 = vpop.eup %2815  ;;  %v1337_v5 = vmul.f32 1.442695, %v1335_v2  ;;  %1400 = vmatpush.bf16.msra.mxu1 %v2649_v1  ;;  %v2660_v1 = vld [vmem:[%s3289_s29 + $0x34] sm:$0xf0] }
 0x4cc   : > { %v1212_v63 = vsel %vm1125_vm8, %v2816_v62, 0.0  ;;  %v2818_v6 = vpop.eup %2817 }
 0x4cd   : > { %1213 = vadd.xlane.f32.xlu0 %v1212_v63  ;;  %2819 = vpow2.f32 %v1337_v5  ;;  %v1209_v8 = vsel %vm1125_vm8, %v2818_v6, 0.0  ;;  %v2651_v63 = vld [vmem:[%s3263_s17 + $0x30] sm:$0xff] }
 0x4d1   : > { %v1428_v3 = vpop.f32.mrf.mxu2 }
 0x4d2   : > { %v1433_v4 = vsel %vm1125_vm8, %v1428_v3, -inf }
 0x4d3   : > { %1434 = vmax.xlane.f32.xlu1 %v1433_v4  ;;  %v3412_v10 = vpop.eup %2819 }
 0x4d4   : > { %v1341_v14 = vsel %vm1125_vm8, %v3412_v10, 0.0 }
 0x4d9   : > { %v1430_v7 = vpop.f32.mrf.mxu2 }
 0x4da   : > { %v1436_v9 = vsel %vm1125_vm8, %v1430_v7, -inf }
 0x4db   : > { %1210 = vadd.xlane.f32.xlu1 %v1209_v8  ;;  %1437 = vmax.xlane.f32.xlu2 %v1436_v9 }
 0x4e3   : > { %1333 = vmax.xlane.f32.xlu2 %v1332_v13  ;;  %1342 = vadd.xlane.f32.xlu1 %v1341_v14 }
 0x4fb   : > { %1221 = vrot.lane.b32.xlu2 %v3380_v11, %s3030_s1 }
 0x540   : > { %v1214_v21 = vpop.xlane.xlu0 %1213 }
 0x546   : > { %v1435_v15 = vpop.xlane.xlu1 %1434 }
 0x547   : > { %v1439_v16 = vsub.f32 %v1428_v3, %v1435_v15  ;;  %v2801_v15 = vld [vmem:[%s3676_s13] ss:$0 sm:$0xff] }
 0x549   : > { %v1441_v17 = vmul.f32 1.442695, %v1439_v16 }
 0x54b   : > { %2821 = vpow2.f32 %v1441_v17 }
 0x54e   : > { %v1438_v18 = vpop.xlane.xlu2 %1437  ;;  %v1211_v19 = vpop.xlane.xlu1 %1210 }
 0x54f   : > { %2823 = vrcp.f32 %v1211_v19  ;;  %v1440_v26 = vsub.f32 %v1430_v7, %v1438_v18 }
 0x550   : > { %2825 = vrcp.f32 %v1214_v21 }
 0x551   : > { %v2822_v20 = vpop.eup %2821  ;;  %v1443_v30 = vmul.f32 1.442695, %v1440_v26 }
 0x552   : > { %v1445_v22 = vsel %vm1125_vm8, %v2822_v20, 0.0 }
 0x553   : > { %1446 = vadd.xlane.f32.xlu1 %v1445_v22 }
 0x555   : > { %v2824_v25 = vpop.eup %2823 }
 0x556   : > { %v1334_v23 = vpop.xlane.xlu2 %1333  ;;  %v2826_v28 = vpop.eup %2825  ;;  %v1217_v29 = vmul.f32 %v2824_v25, %v2818_v6  ;;  %v3033_v25 = vmov 128.0  }
 0x557   : > { %v1336_v24 = vsub.f32 %v1326_v12, %v1334_v23  ;;  %v1218_v31 = vmul.f32 %v2826_v28, %v2816_v62  ;;  %v1343_v40 = vpop.xlane.xlu1 %1342  ;;  %v2652_v62 = vld [vmem:[%s3263_s17 + $0x38] sm:$0xff] }
 0x559   : > { %v1339_v27 = vmul.f32 1.442695, %v1336_v24  ;;  %v1219_v33 = vpack.c.bf16 %v1218_v31, %v1217_v29 }
 0x55b   : > { %2827 = vpow2.f32 %v1339_v27 }
 0x55c   : > { %2829 = vpow2.f32 %v1443_v30 }
 0x55e   : > { %v1222_v32 = vpop.permute.xlu2 %1221 }
 0x55f   : > { %1234 = vmatpush.bf16.msrb.mxu0 %v1222_v32 }
 0x561   : > { %v2828_v34 = vpop.eup %2827 }
 0x562   : > { %2402 = vmatmul.msk.bf16.vlgmr.msrb.gmra.mxu0 %vm1125_vm8, %v1219_v33  ;;  %v1344_v35 = vsel %vm1125_vm8, %v2828_v34, 0.0  ;;  %v2830_v36 = vpop.eup %2829 }
 0x563   : > { %1345 = vadd.xlane.f32.xlu0 %v1344_v35  ;;  %v1448_v37 = vsel %vm1125_vm8, %v2830_v36, 0.0 }
 0x56b   : > { %1449 = vadd.xlane.f32.xlu0 %v1448_v37  ;;  %v2513_v37 = vld [vmem:[%s3289_s29 + $0x70] sm:$0xf] }
 0x56c   : > { %1456 = vrot.lane.b32.xlu1 %v3380_v11, %s3031_s16 }
 0x57f   : > { %1352 = vrot.lane.b32.xlu0 %v3380_v11, %s3032_s2 }
 0x5c6   : > { %v1447_v42 = vpop.xlane.xlu1 %1446 }
 0x5c7   : > { %2831 = vrcp.f32 %v1447_v42  ;;  %v2515_v42 = vld [vmem:[%s3289_s29 + $0x78] sm:$0xf0] }
 0x5cd   : > { %v2832_v48 = vpop.eup %2831 }
 0x5ce   : > { %v1453_v50 = vmul.f32 %v2832_v48, %v2822_v20 }
 0x5d6   : > { %v1346_v43 = vpop.xlane.xlu0 %1345 }
 0x5de   : > { %v1457_v45 = vpop.permute.xlu1 %1456  ;;  %v1450_v46 = vpop.xlane.xlu0 %1449 }
 0x5df   : > { %2833 = vrcp.f32 %v1450_v46  ;;  %v1236_v47 = vpop.f32.mrf.mxu0  ;;  %1469 = vmatpush.bf16.msra.mxu3 %v1457_v45  ;;  %v2505_v45 = vld [vmem:[%s3289_s29 + $0x60] sm:$0xf]  ;;  %v2666_v46 = vld [vmem:[%s3289_s29 + $0x64] sm:$0xf0] }
 0x5e0   : > { %2835 = vrcp.f32 %v1346_v43  ;;  %v2518_v43 = vor.u32 %v2667_v39, %v2515_v42  ;;  %v2506_v48 = vor.u32 %v2666_v46, %v2505_v45  ;;  %v2802_v45 = vld [vmem:[%s3678_s22] ss:$0 sm:$0xff] }
 0x5e1   : > { %2837 = vrcp.f32 %v1343_v40  ;;  %v2514_v40 = vor.u32 %v2668_v38, %v2513_v37 }
 0x5e2   : > { %2839 = vrcp.f32 %v3033_v25  ;;  %1697 = vmatpush.bf16.msrb.mxu2 %v2518_v43 }
 0x5e5   : > { %v2834_v49 = vpop.eup %2833 }
 0x5e6   : > { %v1454_v51 = vmul.f32 %v2834_v49, %v2830_v36  ;;  %v2836_v54 = vpop.eup %2835  ;;  %v2507_v49 = vld [vmem:[%s3289_s29 + $0x68] sm:$0xf0] }
 0x5e7   : > { %v1238_v11 = vpop.f32.mrf.mxu0  ;;  %v2838_v55 = vpop.eup %2837  ;;  %v1350_v56 = vmul.f32 %v2836_v54, %v2828_v34  ;;  %v2499_v54 = vld [vmem:[%s3289_s29 + $0x58] sm:$0xf0] }
 0x5e8   : > { %v1455_v52 = vpack.c.bf16 %v1454_v51, %v1453_v50  ;;  %v1241_v53 = vpack.c.bf16 %v1238_v11, %v1236_v47  ;;  %v1349_v58 = vmul.f32 %v2838_v55, %v3412_v10  ;;  %v2840_v26 = vpop.eup %2839  ;;  %v2665_v47 = vld [vmem:[%s3289_s29 + $0x64] sm:$0xf]  ;;  %v2497_v51 = vld [vmem:[%s3289_s29 + $0x50] sm:$0xf]  ;;  %v2664_v11 = vld [vmem:[%s3289_s29 + $0x54] sm:$0xf0] }
 0x5e9   : > { %v1528_v27 = vmul.f32 128.0, %v2840_v26  ;;  %vm1532_vm9 = vweird.f32 %v2840_v26  ;;  %v2510_v50 = vor.u32 %v2665_v47, %v2507_v49 }
 0x5ea   : > { %2415 = vmatmul.msk.bf16.vlgmr.msrb.gmra.mxu1 %vm1104_vm7, %v1241_v53  ;;  %2441 = vmatmul.msk.bf16.vlgmr.msra.gmra.mxu3 %vm1125_vm8, %v1455_v52  ;;  %v1351_v60 = vpack.c.bf16 %v1350_v56, %v1349_v58  ;;  %v2663_v52 = vld [vmem:[%s3289_s29 + $0x54] sm:$0xf]  ;;  %v2498_v53 = vor.u32 %v2664_v11, %v2497_v51  ;;  %v2489_v56 = vld [vmem:[%s3289_s29 + $0x40] sm:$0xf]  ;;  %v2662_v58 = vld [vmem:[%s3289_s29 + $0x44] sm:$0xf0] }
 0x5eb   : > { %v1529_v28 = vsub.f32 1.0, %v1528_v27  ;;  %1683 = vmatpush.bf16.msrb.mxu1 %v2514_v40  ;;  %1698 = vmatpush.bf16.msrb.mxu2 %v2510_v50  ;;  %v2502_v55 = vor.u32 %v2663_v52, %v2499_v54  ;;  %v2684_v54 = vld [vmem:[%s3243_s18 + $0x78] sm:$0xff] }
 0x5ed   : > { %v1530_v29 = vmul.f32 %v2840_v26, %v1529_v28 }
 0x5ef   : > { %1684 = vmatpush.bf16.msrb.mxu1 %v2506_v48  ;;  %1699 = vmatpush.bf16.msrb.mxu2 %v2502_v55  ;;  %v2674_v55 = vld [vmem:[%s3243_s18 + $0x28] sm:$0xff] }
 0x5f1   : > { %v1353_v59 = vpop.permute.xlu0 %1352 }
 0x5f2   : > { %1365 = vmatpush.bf16.msra.mxu0 %v1353_v59  ;;  %v2661_v59 = vld [vmem:[%s3289_s29 + $0x44] sm:$0xf] }
 0x5f3   : > { %1685 = vmatpush.bf16.msrb.mxu1 %v2498_v53  ;;  %v2675_v53 = vld [vmem:[%s3243_s18 + $0x30] sm:$0xff] }
 0x5f5   : > { %2426 = vmatmul.msk.bf16.vlgmr.msra.gmra.mxu0 %vm1125_vm8, %v1351_v60  ;;  %v2490_v60 = vor.u32 %v2662_v58, %v2489_v56  ;;  %v2683_v56 = vld [vmem:[%s3243_s18 + $0x70] sm:$0xff]  ;;  %v2673_v58 = vld [vmem:[%s3243_s18 + $0x20] sm:$0xff] }
 0x5f6   : > { %1503 = vmatpush.bf16.msrb.mxu0 %v2652_v62  ;;  %v2491_v62 = vld [vmem:[%s3289_s29 + $0x48] sm:$0xf0] }
 0x5f7   : > { %1686 = vmatpush.bf16.msrb.mxu1 %v2490_v60  ;;  %v2672_v60 = vld [vmem:[%s3243_s18 + $0x18] sm:$0xff] }
 0x5fa   : > { %1504 = vmatpush.bf16.msrb.mxu0 %v2651_v63  ;;  %v2494_v63 = vor.u32 %v2661_v59, %v2491_v62  ;;  %v2682_v59 = vld [vmem:[%s3243_s18 + $0x68] sm:$0xff]  ;;  %v2681_v62 = vld [vmem:[%s3243_s18 + $0x60] sm:$0xff] }
 0x5fc   : > { %1700 = vmatpush.bf16.msrb.mxu2 %v2494_v63  ;;  %v2671_v63 = vld [vmem:[%s3243_s18 + $0x10] sm:$0xff] }
 0x5fe   : > { %1895 = vmatpush.bf16.msra.mxu0 %v2684_v54 }
 0x602   : > { %1896 = vmatpush.bf16.msra.mxu0 %v2683_v56  ;;  %v2804_v56 = vld [vmem:[%s807_s0] ss:$0 sm:$0xff] }
 0x606   : > { %1897 = vmatpush.bf16.msra.mxu0 %v2682_v59 }
 0x60a   : > { %1898 = vmatpush.bf16.msra.mxu0 %v2681_v62 }
 0x667   : > { %v1271_v8 = vpop.f32.mrf.mxu1 }
 0x668   : > { %v1301_v10 = vadd.f32 %v3404_v57, %v1271_v8  ;;  %v2657_v8 = vld [vmem:[%s3289_s29 + $0x24] sm:$0xf] }
 0x66d   : > { %v1471_v2 = vpop.f32.mrf.mxu3 }
 0x66f   : > { %v1273_v9 = vpop.f32.mrf.mxu1 }
 0x670   : > { %v1303_v18 = vadd.f32 %v3406_v61, %v1273_v9  ;;  %v1531_v61 = vadd.f32 %v2840_v26, %v1530_v29 }
 0x672   : > { %v1367_v3 = vpop.f32.mrf.mxu0 }
 0x675   : > { %v1473_v4 = vpop.f32.mrf.mxu3 }
 0x676   : > { %v1476_v5 = vpack.c.bf16 %v1473_v4, %v1471_v2  ;;  %v2659_v2 = vld [vmem:[%s3289_s29 + $0x34] sm:$0xf]  ;;  %v2483_v4 = vld [vmem:[%s3289_s29 + $0x38] sm:$0xf0] }
 0x678   : > { %2454 = vmatmul.msk.bf16.vlgmr.msrb.gmra.mxu0 %vm1104_vm7, %v1476_v5  ;;  %v2486_v5 = vor.u32 %v2659_v2, %v2483_v4  ;;  %v2670_v2 = vld [vmem:[%s3243_s18 + $0x8] sm:$0xff]  ;;  %v2679_v4 = vld [vmem:[%s3243_s18 + $0x50] sm:$0xff] }
 0x67a   : > { %v1369_v6 = vpop.f32.mrf.mxu0  ;;  %1701 = vmatpush.bf16.msrb.mxu2 %v2486_v5  ;;  %v2669_v5 = vld [vmem:[%s3243_s18] sm:$0xff] }
 0x67b   : > { %v1372_v7 = vpack.c.bf16 %v1369_v6, %v1367_v3  ;;  %v2482_v3 = vor.u32 %v2660_v1, %v2481_v0  ;;  %v2473_v6 = vld [vmem:[%s3289_s29 + $0x20] sm:$0xf]  ;;  %v2680_v0 = vld [vmem:[%s3243_s18 + $0x58] sm:$0xff] }
 0x67c   : > { %v1597_v1 = vld [vmem:[%s3295_s8] sm:$0x3]  ;;  %1899 = vmatpush.bf16.msra.mxu0 %v2680_v0 }
 0x67d   : > { %2439 = vmatmul.msk.bf16.vlgmr.msra.gmra.mxu1 %vm1104_vm7, %v1372_v7  ;;  %v2658_v7 = vld [vmem:[%s3289_s29 + $0x24] sm:$0xf0] }
 0x67e   : > { %1687 = vmatpush.bf16.msrb.mxu1 %v2482_v3  ;;  %v2474_v9 = vor.u32 %v2658_v7, %v2473_v6  ;;  %v1599_v3 = vperm.slane %v1597_v1, 0 }
 0x680   : > { %1900 = vmatpush.bf16.msra.mxu0 %v2679_v4 }
 0x682   : > { %1688 = vmatpush.bf16.msrb.mxu1 %v2474_v9 }
 0x6f5   : > { %v1506_v12 = vpop.f32.mrf.mxu0 }
 0x6fa   : > { %v1402_v13 = vpop.f32.mrf.mxu1 }
 0x6fb   : > { %v1407_v14 = vadd.f32 %v1402_v13, %v1301_v10  ;;  %v2475_v10 = vld [vmem:[%s3289_s29 + $0x28] sm:$0xf0]  ;;  %v2465_v13 = vld [vmem:[%s3289_s29 + $0x10] sm:$0xf] }
 0x6fd   : > { %v1511_v16 = vadd.f32 %v1506_v12, %v1407_v14  ;;  %v1508_v22 = vpop.f32.mrf.mxu0  ;;  %v2478_v12 = vor.u32 %v2657_v8, %v2475_v10  ;;  %v2656_v14 = vld [vmem:[%s3289_s29 + $0x14] sm:$0xf0]  ;;  %v1600_v10 = vperm.slane %v1597_v1, 1 }
 0x6fe   : > { %v2678_v8 = vld [vmem:[%s3243_s18 + $0x48] sm:$0xff] }
 0x6ff   : > { %v1517_v17 = vadd.f32 %v2801_v15, %v1511_v16  ;;  %1702 = vmatpush.bf16.msrb.mxu2 %v2478_v12  ;;  %v2466_v16 = vor.u32 %v2656_v14, %v2465_v13  ;;  %1901 = vmatpush.bf16.msra.mxu0 %v2678_v8  ;;  %v2677_v13 = vld [vmem:[%s3243_s18 + $0x40] sm:$0xff] }
 0x701   : > { %v1519_v19 = vadd.f32 %v1517_v17, %v3363_v41  ;;  %v3448_v41 = vsel %vm1532_vm9, %v2840_v26, %v1531_v61  ;;  %v2467_v17 = vld [vmem:[%s3289_s29 + $0x18] sm:$0xf0]  ;;  %1689 = vmatpush.bf16.msrb.mxu1 %v2466_v16 }
 0x702   : > { %v1404_v20 = vpop.f32.mrf.mxu1 }
 0x703   : > { %v1408_v21 = vadd.f32 %v1404_v20, %v1303_v18  ;;  %1523 = vadd.xlane.f32.xlu2 %v1519_v19  ;;  %v2654_v20 = vld [vmem:[%s3289_s29 + $0x4] sm:$0xf0]  ;;  %1902 = vmatpush.bf16.msra.mxu0 %v2677_v13 }
 0x705   : > { %v1512_v23 = vadd.f32 %v1508_v22, %v1408_v21  ;;  %v2653_v21 = vld [vmem:[%s3289_s29 + $0x4] sm:$0xf] }
 0x707   : > { %v1518_v57 = vadd.f32 %v2801_v15, %v1512_v23  ;;  %v2655_v15 = vld [vmem:[%s3289_s29 + $0x14] sm:$0xf] }
 0x708   : > { %v2470_v18 = vor.u32 %v2655_v15, %v2467_v17 }
 0x709   : > { %v1520_v24 = vadd.f32 %v1518_v57, %v3365_v44  ;;  %v2459_v57 = vld [vmem:[%s3289_s29 + $0x8] sm:$0xf0] }
 0x70a   : > { %1703 = vmatpush.bf16.msrb.mxu2 %v2470_v18  ;;  %v2462_v25 = vor.u32 %v2653_v21, %v2459_v57 }
 0x70b   : > { %1525 = vadd.xlane.f32.xlu0 %v1520_v24 }
 0x70e   : > { %1704 = vmatpush.bf16.msrb.mxu2 %v2462_v25 }
 0x776   : > { %v1524_v30 = vpop.xlane.xlu2 %1523 }
 0x777   : > { %v1534_v31 = vmul.f32 %v3448_v41, %v1524_v30 }
 0x779   : > { %v3451_v32 = vsub.f32 %v1519_v19, %v1534_v31  ;;  %v2457_v19 = vld [vmem:[%s3289_s29] sm:$0xf] }
 0x77a   : > { %v2458_v23 = vor.u32 %v2654_v20, %v2457_v19 }
 0x77b   : > { %v1538_v44 = vmul.f32 %v3451_v32, %v3451_v32 }
 0x77c   : > { %1690 = vmatpush.bf16.msrb.mxu1 %v2458_v23 }
 0x77d   : > { %1540 = vadd.xlane.f32.xlu1 %v1538_v44 }
 0x77e   : > { %v1526_v33 = vpop.xlane.xlu0 %1525 }
 0x77f   : > { %v1535_v34 = vmul.f32 %v3448_v41, %v1526_v33 }
 0x781   : > { %v3456_v35 = vsub.f32 %v1520_v24, %v1535_v34 }
 0x783   : > { %v1539_v36 = vmul.f32 %v3456_v35, %v3456_v35 }
 0x785   : > { %1542 = vadd.xlane.f32.xlu2 %v1539_v36 }
 0x7f0   : > { %v1541_v22 = vpop.xlane.xlu1 %1540 }
 0x7f1   : > { %v1544_v24 = vmul.f32 %v1541_v22, %v3448_v41 }
 0x7f3   : > { %v1546_v26 = vadd.f32 1e-12, %v1544_v24 }
 0x7f5   : > { %2841 = vrsqrt.f32 %v1546_v26  ;;  %vm1554_vm11 = vweird.f32 %v1546_v26 }
 0x7f8   : > { %v1543_v27 = vpop.xlane.xlu2 %1542 }
 0x7f9   : > { %v1545_v28 = vmul.f32 %v1543_v27, %v3448_v41 }
 0x7fb   : > { %v2842_v29 = vpop.eup %2841  ;;  %v1547_v61 = vadd.f32 1e-12, %v1545_v28 }
 0x7fc   : > { %v1549_v30 = vmul.f32 %v2842_v29, %v1546_v26  ;;  %vm1555_vm10 = vweird.f32 %v2842_v29 }
 0x7fd   : > { %2843 = vrsqrt.f32 %v1547_v61  ;;  %vm1556_vm12 = vmor %vm1554_vm11, %vm1555_vm10  ;;  %vm1564_vm14 = vweird.f32 %v1547_v61 }
 0x7fe   : > { %v1550_v31 = vmul.f32 %v2842_v29, %v1549_v30 }
 0x800   : > { %v1551_v44 = vmul.f32 0.5, %v1550_v31 }
 0x802   : > { %v1552_v33 = vsub.f32 1.5, %v1551_v44 }
 0x803   : > { %v2844_v34 = vpop.eup %2843 }
 0x804   : > { %v1553_v36 = vmul.f32 %v2842_v29, %v1552_v33  ;;  %v1559_v37 = vmul.f32 %v2844_v34, %v1547_v61  ;;  %vm1565_vm13 = vweird.f32 %v2844_v34 }
 0x805   : > { %vm1566_vm15 = vmor %vm1564_vm14, %vm1565_vm13 }
 0x806   : > { %v1560_v38 = vmul.f32 %v2844_v34, %v1559_v37  ;;  %v1557_v39 = vsel %vm1556_vm12, %v2842_v29, %v1553_v36 }
 0x807   : > { %v1568_v43 = vmul.f32 %v1557_v39, %v3451_v32  ;;  %v2803_v32 = vld [vmem:[%s3680_s15] ss:$0 sm:$0xff] }
 0x808   : > { %v1561_v40 = vmul.f32 0.5, %v1560_v38 }
 0x809   : > { %v1573_v49 = vmul.f32 %v2802_v45, %v1568_v43 }
 0x80a   : > { %v1562_v42 = vsub.f32 1.5, %v1561_v40 }
 0x80b   : > { %v3506_v51 = vadd.f32 %v2803_v32, %v1573_v49 }
 0x80c   : > { %v1563_v46 = vmul.f32 %v2844_v34, %v1562_v42 }
 0x80e   : > { %v1567_v47 = vsel %vm1566_vm15, %v2844_v34, %v1563_v46 }
 0x80f   : > { %v1569_v48 = vmul.f32 %v1567_v47, %v3456_v35  ;;  %v2676_v35 = vld [vmem:[%s3243_s18 + $0x38] sm:$0xff] }
 0x810   : > { %1881 = vmatpush.bf16.msrb.mxu3 %v2676_v35 }
 0x811   : > { %v1574_v50 = vmul.f32 %v2802_v45, %v1569_v48 }
 0x813   : > { %v3508_v11 = vadd.f32 %v2803_v32, %v1574_v50 }
 0x814   : > { %1882 = vmatpush.bf16.msrb.mxu3 %v2675_v53 }
 0x815   : > { %v1580_v52 = vpack.c.bf16 %v3508_v11, %v3506_v51 }
 0x817   : > { %1691 = vmatmul.bf16.vlgmr.msrb.gmra.mxu1 %v1580_v52  ;;  %1705 = vmatmul.bf16.vlgmr.msrb.gmra.mxu2 %v1580_v52 }
 0x818   : > { %1883 = vmatpush.bf16.msrb.mxu3 %v2674_v55 }
 0x81c   : > { %1884 = vmatpush.bf16.msrb.mxu3 %v2673_v58 }
 0x820   : > { %1885 = vmatpush.bf16.msrb.mxu3 %v2672_v60 }
 0x824   : > { %1886 = vmatpush.bf16.msrb.mxu3 %v2671_v63 }
 0x828   : > { %1887 = vmatpush.bf16.msrb.mxu3 %v2670_v2 }
 0x82c   : > { %1888 = vmatpush.bf16.msrb.mxu3 %v2669_v5 }
 0x894   : > { %v1692_v6 = vpop.f32.mrf.mxu1 }
 0x895   : > { %v1693_v7 = vadd.f32 %v1692_v6, %v1599_v3 }
 0x897   : > { %v1711_v9 = vmul.f32 %v1693_v7, %v1693_v7 }
 0x899   : > { %v1715_v12 = vmul.f32 %v1711_v9, %v1693_v7 }
 0x89a   : > { %v1706_v14 = vpop.f32.mrf.mxu2 }
 0x89b   : > { %v1719_v15 = vmul.f32 0.044715, %v1715_v12  ;;  %v1707_v16 = vadd.f32 %v1706_v14, %v1600_v10 }
 0x89c   : > { %v1694_v17 = vpop.f32.mrf.mxu1 }
 0x89d   : > { %v1723_v18 = vadd.f32 %v1719_v15, %v1693_v7  ;;  %v1712_v19 = vmul.f32 %v1707_v16, %v1707_v16  ;;  %v1695_v20 = vadd.f32 %v1694_v17, %v1599_v3 }
 0x89f   : > { %v1727_v21 = vmul.f32 0.7978846, %v1723_v18  ;;  %v1716_v22 = vmul.f32 %v1712_v19, %v1707_v16  ;;  %v1713_v23 = vmul.f32 %v1695_v20, %v1695_v20 }
 0x8a1   : > { %v1720_v57 = vmul.f32 0.044715, %v1716_v22  ;;  %v1717_v24 = vmul.f32 %v1713_v23, %v1695_v20  ;;  %2845 = vtanh.f32 %v1727_v21 }
 0x8a2   : > { %v1708_v25 = vpop.f32.mrf.mxu2 }
 0x8a3   : > { %v1724_v26 = vadd.f32 %v1720_v57, %v1707_v16  ;;  %v1721_v27 = vmul.f32 0.044715, %v1717_v24  ;;  %v1709_v28 = vadd.f32 %v1708_v25, %v1600_v10  ;;  %v2805_v25 = vld [vmem:[%s810_s21] ss:$0 sm:$0xff] }
 0x8a5   : > { %v1728_v29 = vmul.f32 0.7978846, %v1724_v26  ;;  %v1725_v61 = vadd.f32 %v1721_v27, %v1695_v20  ;;  %v1714_v30 = vmul.f32 %v1709_v28, %v1709_v28  ;;  %v2806_v27 = vld [vmem:[%s813_s14] ss:$0 sm:$0xff]  ;;  %s3684_s14 = sld [smem:[#allocation33_spill]] (!%p2583_p5) }
 0x8a7   : > { %v1729_v31 = vmul.f32 0.7978846, %v1725_v61  ;;  %v1718_v44 = vmul.f32 %v1714_v30, %v1709_v28  ;;  %2847 = vtanh.f32 %v1728_v29  ;;  %v2846_v33 = vpop.eup %2845 }
 0x8a8   : > { %v1735_v37 = vadd.f32 1.0, %v2846_v33 }
 0x8a9   : > { %2849 = vtanh.f32 %v1729_v31  ;;  %v1722_v34 = vmul.f32 0.044715, %v1718_v44 }
 0x8aa   : > { %v1739_v42 = vmul.f32 0.5, %v1735_v37 }
 0x8ab   : > { %v1726_v36 = vadd.f32 %v1722_v34, %v1709_v28 }
 0x8ac   : > { %v1743_v47 = vmul.f32 %v1739_v42, %v1693_v7 }
 0x8ad   : > { %v1730_v38 = vmul.f32 0.7978846, %v1726_v36  ;;  %v2848_v39 = vpop.eup %2847 }
 0x8ae   : > { %v1736_v45 = vadd.f32 1.0, %v2848_v39 }
 0x8af   : > { %v2850_v40 = vpop.eup %2849  ;;  %2851 = vtanh.f32 %v1730_v38 }
 0x8b0   : > { %v1737_v43 = vadd.f32 1.0, %v2850_v40  ;;  %v1740_v32 = vmul.f32 0.5, %v1736_v45 }
 0x8b2   : > { %v1741_v46 = vmul.f32 0.5, %v1737_v43  ;;  %v1744_v53 = vmul.f32 %v1740_v32, %v1707_v16 }
 0x8b4   : > { %v1745_v48 = vmul.f32 %v1741_v46, %v1695_v20 }
 0x8b5   : > { %v2852_v49 = vpop.eup %2851 }
 0x8b6   : > { %v1738_v50 = vadd.f32 1.0, %v2852_v49  ;;  %v1747_v52 = vpack.c.bf16 %v1745_v48, %v1743_v47 }
 0x8b8   : > { %v1742_v35 = vmul.f32 0.5, %v1738_v50  ;;  %1889 = vmatmul.bf16.vlgmr.msrb.gmra.mxu3 %v1747_v52 }
 0x8ba   : > { %v1746_v54 = vmul.f32 %v1742_v35, %v1709_v28 }
 0x8bc   : > { %v1748_v55 = vpack.c.bf16 %v1746_v54, %v1744_v53 }
 0x8be   : > { %1903 = vmatmul.bf16.vlgmr.msra.gmra.mxu0 %v1748_v55 }
 0x93b   : > { %v1890_v58 = vpop.f32.mrf.mxu3  ;;  %v1904_v59 = vpop.f32.mrf.mxu0 }
 0x93c   : > { %v1891_v60 = vadd.f32 %v2804_v56, %v1890_v58 }
 0x93e   : > { %v1905_v62 = vadd.f32 %v1904_v59, %v1891_v60 }
 0x940   : > { %v1909_v63 = vadd.f32 %v1905_v62, %v3506_v51 }
 0x942   : > { %1913 = vadd.xlane.f32.xlu2 %v1909_v63 }
 0x943   : > { %v1892_v0 = vpop.f32.mrf.mxu3  ;;  %v1906_v2 = vpop.f32.mrf.mxu0 }
 0x944   : > { %v1893_v1 = vadd.f32 %v2804_v56, %v1892_v0 }
 0x946   : > { %v1907_v3 = vadd.f32 %v1906_v2, %v1893_v1 }
 0x948   : > { %v1910_v4 = vadd.f32 %v1907_v3, %v3508_v11 }
 0x94a   : > { %1915 = vadd.xlane.f32.xlu2 %v1910_v4 }
 0x9b5   : > { %v1914_v5 = vpop.xlane.xlu2 %1913 }
 0x9b6   : > { %v1917_v6 = vmul.f32 %v1914_v5, %v3448_v41 }
 0x9b8   : > { %v1919_v7 = vsub.f32 %v1909_v63, %v1917_v6 }
 0x9ba   : > { %v1921_v8 = vmul.f32 %v1919_v7, %v1919_v7 }
 0x9bc   : > { %1923 = vadd.xlane.f32.xlu0 %v1921_v8 }
 0x9bd   : > { %v1916_v9 = vpop.xlane.xlu2 %1915 }
 0x9be   : > { %v1918_v10 = vmul.f32 %v1916_v9, %v3448_v41 }
 0x9c0   : > { %v1920_v12 = vsub.f32 %v1910_v4, %v1918_v10 }
 0x9c2   : > { %v1922_v13 = vmul.f32 %v1920_v12, %v1920_v12 }
 0x9c4   : > { %1925 = vadd.xlane.f32.xlu1 %v1922_v13 }
 0xa2f   : > { %v1924_v51 = vpop.xlane.xlu0 %1923 }
 0xa30   : > { %v1927_v14 = vmul.f32 %v1924_v51, %v3448_v41 }
 0xa32   : > { %v1929_v15 = vadd.f32 1e-12, %v1927_v14 }
 0xa34   : > { %2853 = vrsqrt.f32 %v1929_v15  ;;  %vm1937_vm1 = vweird.f32 %v1929_v15 }
 0xa37   : > { %v1926_v11 = vpop.xlane.xlu1 %1925 }
 0xa38   : > { %v1928_v16 = vmul.f32 %v1926_v11, %v3448_v41 }
 0xa3a   : > { %v2854_v17 = vpop.eup %2853  ;;  %v1930_v18 = vadd.f32 1e-12, %v1928_v16 }
 0xa3b   : > { %v1932_v19 = vmul.f32 %v2854_v17, %v1929_v15  ;;  %vm1938_vm0 = vweird.f32 %v2854_v17 }
 0xa3c   : > { %2855 = vrsqrt.f32 %v1930_v18  ;;  %vm1939_vm2 = vmor %vm1937_vm1, %vm1938_vm0  ;;  %vm1947_vm4 = vweird.f32 %v1930_v18 }
 0xa3d   : > { %v1933_v20 = vmul.f32 %v2854_v17, %v1932_v19 }
 0xa3f   : > { %v1934_v21 = vmul.f32 0.5, %v1933_v20 }
 0xa41   : > { %v1935_v22 = vsub.f32 1.5, %v1934_v21 }
 0xa42   : > { %v2856_v23 = vpop.eup %2855 }
 0xa43   : > { %v1936_v57 = vmul.f32 %v2854_v17, %v1935_v22  ;;  %v1942_v24 = vmul.f32 %v2856_v23, %v1930_v18  ;;  %vm1948_vm3 = vweird.f32 %v2856_v23 }
 0xa44   : > { %vm1949_vm5 = vmor %vm1947_vm4, %vm1948_vm3 }
 0xa45   : > { %v1940_v41 = vsel %vm1939_vm2, %v2854_v17, %v1936_v57  ;;  %v1943_v26 = vmul.f32 %v2856_v23, %v1942_v24 }
 0xa46   : > { %v1951_v28 = vmul.f32 %v1940_v41, %v1919_v7 }
 0xa47   : > { %v1944_v29 = vmul.f32 0.5, %v1943_v26 }
 0xa48   : > { %v1956_v61 = vmul.f32 %v2805_v25, %v1951_v28 }
 0xa49   : > { %v1945_v30 = vsub.f32 1.5, %v1944_v29 }
 0xa4a   : > { %v1961_v31 = vadd.f32 %v2806_v27, %v1956_v61 }
 0xa4b   : > { %v1946_v44 = vmul.f32 %v2856_v23, %v1945_v30 }
 0xa4c   : > { %1963 = vst [vmem:[#allocation2] sm:$0xff] %v1961_v31 }
 0xa4d   : > { %v1950_v33 = vsel %vm1949_vm5, %v2856_v23, %v1946_v44 }
 0xa4e   : > { %v1952_v34 = vmul.f32 %v1950_v33, %v1920_v12 }
 0xa50   : > { %v1957_v36 = vmul.f32 %v2805_v25, %v1952_v34  ;;  %1968 = sbr.rel (%p2583_p5) target bundleno = 2814 (0xafe), region = 108 }
 0xa52   : > { %v1962_v37 = vadd.f32 %v2806_v27, %v1957_v36 }
 0xa54   : > { %1964 = vst [vmem:[#allocation2 + $0x8] sm:$0xff] %v1962_v37 }
 0xa55   : > { %v2692_v38 = vld [vmem:[%s3684_s14 + $0x38] sm:$0xff]  ;;  %v2691_v39 = vld [vmem:[%s3684_s14 + $0x30] sm:$0xff]  ;;  %v2690_v40 = vld [vmem:[%s3684_s14 + $0x28] sm:$0xff] }
 0xa56   : > { %2040 = vmatpush.bf16.msra.mxu0 %v2692_v38  ;;  %v2689_v42 = vld [vmem:[%s3684_s14 + $0x20] sm:$0xff]  ;;  %v2688_v43 = vld [vmem:[%s3684_s14 + $0x18] sm:$0xff]  ;;  %v2687_v45 = vld [vmem:[%s3684_s14 + $0x10] sm:$0xff] }
 0xa57   : > { %v2686_v46 = vld [vmem:[%s3684_s14 + $0x8] sm:$0xff]  ;;  %v2685_v47 = vld [vmem:[%s3684_s14] sm:$0xff]  ;;  %v2857_v50 = vld [vmem:[#allocation7] ss:$0 sm:$0xff] }
 0xa58   : > { %v1969_v48 = vld [vmem:[#allocation2] sm:$0xff] }
 0xa5a   : > { %2041 = vmatpush.bf16.msra.mxu0 %v2691_v39 }
 0xa5b   : > { %v1970_v49 = vld [vmem:[#allocation2 + $0x8] sm:$0xff] }
 0xa5c   : > { %v1971_v32 = vpack.c.bf16 %v1970_v49, %v1969_v48 }
 0xa5e   : > { %2042 = vmatpush.bf16.msra.mxu0 %v2690_v40 }
 0xa62   : > { %2043 = vmatpush.bf16.msra.mxu0 %v2689_v42 }
 0xa66   : > { %2044 = vmatpush.bf16.msra.mxu0 %v2688_v43 }
 0xa6a   : > { %2045 = vmatpush.bf16.msra.mxu0 %v2687_v45 }
 0xa6e   : > { %2046 = vmatpush.bf16.msra.mxu0 %v2686_v46 }
 0xa72   : > { %2047 = vmatpush.bf16.msra.mxu0 %v2685_v47 }
 0xa75   : > { %2048 = vmatmul.bf16.vlgmr.msra.gmra.mxu0 %v1971_v32 }
 0xaf2   : > { %v2049_v52 = vpop.f32.mrf.mxu0 }
 0xaf3   : > { %v2050_v35 = vadd.f32 %v2857_v50, %v2049_v52 }
 0xaf5   : > { %2054 = vst [vmem:[%s3312_s25] sm:$0xff] %v2050_v35 }
 0xafa   : > { %v2051_v53 = vpop.f32.mrf.mxu0 }
 0xafb   : > { %v2052_v54 = vadd.f32 %v2857_v50, %v2051_v53 }
 0xafd   : > { %2055 = vst [vmem:[%s3312_s25 + $0x8] sm:$0xff] %v2052_v54 }
 0xafe PF: > { %s33_s30 = sadd.s32 1, %s3022_s30   ;;  %s3685_s24 = sld [smem:[#allocation11_spill]] }
 0xaff   : > { %p30_p6 = scmp.ge.s32.totalorder %s33_s30, 6   ;;  %s3686_s25 = sld [smem:[#allocation12_spill]] }
 0xb00   : > { %s3687_s26 = sld [smem:[#allocation17_spill]] }
 0xb01   : > { %s3688_s27 = sld [smem:[#allocation13_spill]]  ;;  %32 = sbr.rel (!%p30_p6) target bundleno = 26 (0x1a), region = 189 }
 0xb02   : > { %s3689_s28 = sld [smem:[#allocation14_spill]] }
 0xb03   : > { %s3690_s29 = sld [smem:[#allocation15_spill]] }
 0xb04   : > { %s3691_s0 = sld [smem:[#allocation16_spill]] }
 0xb06   :  { %2078 = vsyncpa [#allocation4], 1 }
 0xb07   :  { %2080 = vsyncpa [#allocation4 + $0x1], 1 }
 0xb08   :  { %2081 = vsyncpa [#allocation6], 1 }
 0xb09   :  { %2083 = vsyncpa [#allocation6 + $0x1], 1 }

</bundles_post_ra>
